<compile_context>
chip_gen: v7x
topology: tpu7x:2x2x1
jax: 0.10.0
libtpu: 0.0.40
codegen_flags: <defaults>
</compile_context>

<pallas_src>
import jax
import jax.numpy as jnp
from jax import lax
from jax.experimental import pallas as pl
from jax.experimental.pallas import tpu as pltpu


def _retrieval_qa_kernel(tok_ref, len_ref, labels_ref, sqerr_ref,
                         acc_ref, msum_ref):
    """Grid = (batch_blocks, seq_blocks); axis 0 parallel, axis 1 reduction.

    tok_ref:    (3, bb, sc, H)  encoder hidden states (bf16/f32), this S-chunk
    len_ref:    (3, bb, 1, 1)   per-sentence valid-token counts (int32)
    labels_ref: (bb, 1)         regression targets (f32)
    sqerr_ref:  (bb, 1)         per-row squared error (output, f32)
    acc_ref:    (3, bb, H)      f32 scratch: running sum of tok*mask over S
    msum_ref:   (3, bb, 1)      f32 scratch: running sum of mask over S
    """
    k = pl.program_id(1)

    @pl.when(k == 0)
    def _init():
        acc_ref[...] = jnp.zeros_like(acc_ref)
        msum_ref[...] = jnp.zeros_like(msum_ref)

    _, bb, sc, _ = tok_ref.shape
    # Rebuild the attention mask for this S-chunk from the lengths: iota along
    # the sublane (S) dim, lane dim kept at 1 so the mask lane-broadcasts
    # against the (..., H) token block.  Replaces the dense (3,B,S,1) mask.
    pos = lax.broadcasted_iota(jnp.int32, (3, bb, sc, 1), 2) + k * sc
    mask = (pos < len_ref[...]).astype(jnp.float32)             # (3, bb, sc, 1)

    # Cast AFTER the (possibly bf16) HBM->VMEM transfer; accumulate in f32.
    tok = tok_ref[...].astype(jnp.float32)                      # (3, bb, sc, H)
    acc_ref[...] += jnp.sum(tok * mask, axis=2)                 # (3, bb, H)
    msum_ref[...] += jnp.sum(mask, axis=2)                      # (3, bb, 1)

    @pl.when(k == pl.num_programs(1) - 1)
    def _finalize():
        # mean_pooling: sum_S(tok*mask) / clamp(sum_S(mask), 1e-9)
        sent = acc_ref[...] / jnp.maximum(msum_ref[...], 1e-9)  # (3, bb, H)
        emb_q, emb_p, emb_n = sent[0], sent[1], sent[2]         # (bb, H) views
        # similarity_fct == 'dot', scale == 1
        scores_pos = jnp.sum(emb_q * emb_p, axis=-1, keepdims=True)   # (bb, 1)
        scores_neg = jnp.sum(emb_q * emb_n, axis=-1, keepdims=True)   # (bb, 1)
        diff = (scores_pos - scores_neg) - labels_ref[...]
        sqerr_ref[...] = diff * diff


def _vmem_budget():
    """(vmem_limit_bytes, per-buffer token-block budget) for this chip."""
    cap = 64 << 20                                   # safe floor (v7x per-TC)
    try:
        info = pltpu.get_tpu_info()
        cap = int(getattr(info, "vmem_capacity_bytes", cap)) or cap
    except Exception:
        pass
    vmem_limit = (cap * 3) // 4                      # headroom for internals
    # 2 double-buffered token blocks take ~1/3 of the limit; the rest covers
    # the fused f32 cast/product intermediates, accumulators and small blocks.
    per_buffer = min(vmem_limit // 6, 16 << 20)
    return vmem_limit, per_buffer


def _pick_blocks(batch, seq_len, hidden, itemsize, per_buffer_budget):
    """Choose (block_batch, block_seq): biggest block that fits the budget,
    preferring >=2 steps on the parallel batch axis (v7x megacore)."""
    bb_opts = sorted({d for d in range(8, batch + 1, 8) if batch % d == 0}
                     | {batch})
    sc_opts = sorted({d for d in range(8, seq_len + 1, 8) if seq_len % d == 0}
                     | {seq_len})

    def tok_bytes(bb, sc):
        return 3 * bb * sc * hidden * itemsize

    best = None
    for prefer_parallel in (True, False):
        for bb in bb_opts:
            if prefer_parallel and batch // bb < 2:
                continue
            for sc in sc_opts:
                if tok_bytes(bb, sc) > per_buffer_budget:
                    continue
                key = (bb * sc, sc)                  # max block; tie -> long S runs
                if best is None or key > best[0]:
                    best = (key, bb, sc)
        if best is not None:
            break
    if best is None:                                 # nothing fits: smallest legal
        return bb_opts[0], sc_opts[0]
    return best[1], best[2]


def retrieval_qa_loss(token_embeddings, attention_mask, labels, batch_size,
                      block_batch=None, block_seq=None):
    """Pallas implementation of RetrievalQAEmbedder.forward's own compute.

    token_embeddings: (3*B, S, H)  encoder last_hidden_state (bf16 or f32)
    attention_mask:   (3*B, S)     0/1 mask (assumed right-padded/contiguous)
    labels:           (B,) or (B, 1)
    """
    n_sent, seq_len, hidden = token_embeddings.shape
    if n_sent != 3 * batch_size:
        raise ValueError(f"expected {3 * batch_size} sentences, got {n_sent}")

    # (3, B, S, H): query/pos/neg on a leading axis (free row-major reshape).
    # No hidden-dim padding: block-H == full-H is legal and a jnp.pad would
    # cost an extra full HBM pass over the largest tensor.
    tok = token_embeddings.reshape(3, batch_size, seq_len, hidden)

    # Per-sentence valid-token counts replace the dense (3,B,S,1) f32 mask.
    # NOTE: assumes the standard right-padded mask (contiguous 1s from pos 0).
    lengths = jnp.sum(attention_mask, axis=1).astype(jnp.int32)
    lengths = lengths.reshape(3, batch_size, 1, 1)
    labels = labels.astype(jnp.float32).reshape(batch_size, 1)

    itemsize = token_embeddings.dtype.itemsize
    vmem_limit, per_buffer = _vmem_budget()
    bb, sc = _pick_blocks(batch_size, seq_len, hidden, itemsize, per_buffer)
    if block_batch is not None:
        bb = block_batch
    if block_seq is not None:
        sc = block_seq
    grid = (batch_size // bb, seq_len // sc)

    sqerr = pl.pallas_call(
        _retrieval_qa_kernel,
        out_shape=jax.ShapeDtypeStruct((batch_size, 1), jnp.float32),
        grid_spec=pltpu.PrefetchScalarGridSpec(
            num_scalar_prefetch=0,
            grid=grid,
            in_specs=[
                pl.BlockSpec((3, bb, sc, hidden), lambda i, k: (0, i, k, 0)),
                pl.BlockSpec((3, bb, 1, 1), lambda i, k: (0, i, 0, 0)),
                pl.BlockSpec((bb, 1), lambda i, k: (i, 0)),
            ],
            out_specs=pl.BlockSpec((bb, 1), lambda i, k: (i, 0)),
            scratch_shapes=[
                pltpu.VMEM((3, bb, hidden), jnp.float32),   # sum(tok*mask)
                pltpu.VMEM((3, bb, 1), jnp.float32),        # sum(mask)
            ],
        ),
        compiler_params=pltpu.CompilerParams(
            dimension_semantics=("parallel", "arbitrary"),
            vmem_limit_bytes=vmem_limit),
        cost_estimate=pl.CostEstimate(
            flops=int(4 * token_embeddings.size),
            transcendentals=0,
            bytes_accessed=int(token_embeddings.size * itemsize
                               + attention_mask.size * 4
                               + 2 * batch_size * 4)),
    )(tok, lengths, labels)

    # nn.MSELoss(reduction='mean') over the B margin predictions.
    return jnp.mean(sqerr)


def _reference_loss(token_embeddings, attention_mask, labels, batch_size):
    """Pure-JAX reference reproducing the PyTorch forward semantics (f32)."""
    mask = attention_mask.astype(jnp.float32)[:, :, None]
    sum_embeddings = jnp.sum(token_embeddings * mask, axis=1)
    sum_mask = jnp.clip(jnp.sum(mask, axis=1), 1e-9, None)
    sent = sum_embeddings / sum_mask
    sent = sent.reshape(3, batch_size, sent.shape[-1])
    q, p, n = sent[0], sent[1], sent[2]
    scores_pos = jnp.sum(q * p, axis=-1)
    scores_neg = jnp.sum(q * n, axis=-1)
    margin = scores_pos - scores_neg
    return jnp.mean((margin - labels.squeeze()) ** 2)


if __name__ == "__main__":
    # Small shapes consistent with the module: 3*batch sentences, seq tokens,
    # hidden dim (deliberately NOT a multiple of 128 to exercise the no-pad
    # path; seq is a multiple of 8 so the sequence axis tiles).
    batch_size = 16
    seq_len = 24
    hidden = 96
    vocab = 100
    n_sent = 3 * batch_size

    key = jax.random.PRNGKey(0)
    k_emb, k_ids, k_len, k_lab = jax.random.split(key, 4)

    # TODO(synk): the full transformer `sent_encoder` has no clean single-kernel
    # Pallas equivalent; a deterministic embedding lookup stands in for
    # model_output[0] (the last_hidden_state), produced in bf16 like a real
    # mixed-precision encoder so the kernel's bf16 HBM transfer is exercised.
    embedding_table = jax.random.normal(k_emb, (vocab, hidden), dtype=jnp.float32)
    input_ids = jax.random.randint(k_ids, (n_sent, seq_len), 0, vocab)
    token_embeddings = embedding_table[input_ids].astype(jnp.bfloat16)  # (3B,S,H)

    # Ragged, right-padded attention mask (at least 1 valid token per sentence).
    lengths = jax.random.randint(k_len, (n_sent,), 1, seq_len + 1)
    attention_mask = (jnp.arange(seq_len)[None, :] < lengths[:, None]).astype(jnp.float32)

    labels = jax.random.normal(k_lab, (batch_size, 1), dtype=jnp.float32)

    ref = _reference_loss(token_embeddings.astype(jnp.float32),
                          attention_mask, labels, batch_size)

    # Auto-sized blocks (the path production shapes would take).
    loss_auto = retrieval_qa_loss(token_embeddings, attention_mask, labels,
                                  batch_size)
    # Forced small blocks: exercises the parallel batch axis (2 steps) and the
    # sequence-reduction accumulator path (3 steps).
    loss_small = retrieval_qa_loss(token_embeddings, attention_mask, labels,
                                   batch_size, block_batch=8, block_seq=8)
    loss_auto, loss_small = jax.block_until_ready((loss_auto, loss_small))

    for name, val in (("auto", loss_auto), ("small", loss_small)):
        if not jnp.allclose(val, ref, rtol=1e-4, atol=1e-5):
            raise AssertionError(f"Pallas loss ({name}) {val} != reference {ref}")

    print("KERNEL_OK")
</pallas_src>

<mosaic_0001>
module attributes {stable_mosaic.version = 11 : i64} {
  func.func @_retrieval_qa_kernel(%arg0: i32, %arg1: i32, %arg2: memref<3x8x24x96xbf16, #tpu.memory_space<vmem>>, %arg3: memref<3x8x1x1xi32, #tpu.memory_space<vmem>>, %arg4: memref<8x1xf32, #tpu.memory_space<vmem>>, %arg5: memref<8x1xf32, #tpu.memory_space<vmem>>, %arg6: memref<3x8x96xf32, #tpu.memory_space<vmem>>, %arg7: memref<3x8x1xf32, #tpu.memory_space<vmem>>) attributes {dimension_semantics = [#tpu.dimension_semantics<parallel>, #tpu.dimension_semantics<arbitrary>], iteration_bounds = array<i64: 2, 1>, scalar_prefetch = 0 : i64, scratch_operands = 2 : i64, tpu.core_type = #tpu.core_type<tc>, window_params = [{transform_indices = @transform_0, window_bounds = array<i64: 3, 8, 24, 96>}, {transform_indices = @transform_1, window_bounds = array<i64: 3, 8, 1, 1>}, {transform_indices = @transform_2, window_bounds = array<i64: 8, 1>}, {transform_indices = @transform_3, window_bounds = array<i64: 8, 1>}]} {
    %c0_i32 = arith.constant 0 : i32
    %0 = arith.cmpi eq, %arg1, %c0_i32 : i32
    %1 = arith.extui %0 : i1 to i32
    %c0_i32_0 = arith.constant 0 : i32
    %2 = arith.cmpi ne, %1, %c0_i32_0 : i32
    scf.if %2 {
      %cst_23 = arith.constant 0.000000e+00 : f32
      %27 = vector.broadcast %cst_23 : f32 to vector<3x8x96xf32>
      %c0_24 = arith.constant 0 : index
      %c0_25 = arith.constant 0 : index
      %c0_26 = arith.constant 0 : index
      %28 = vector.load %arg6[%c0_24, %c0_25, %c0_26] : memref<3x8x96xf32, #tpu.memory_space<vmem>>, vector<3x8x96xf32>
      tpu.vector_store %arg6[%c0_24, %c0_25, %c0_26], %27 {strides = array<i32>} : memref<3x8x96xf32, #tpu.memory_space<vmem>>, vector<3x8x96xf32>,
      %cst_27 = arith.constant 0.000000e+00 : f32
      %29 = vector.broadcast %cst_27 : f32 to vector<3x8x1xf32>
      %c0_28 = arith.constant 0 : index
      %c0_29 = arith.constant 0 : index
      %c0_30 = arith.constant 0 : index
      %30 = vector.load %arg7[%c0_28, %c0_29, %c0_30] : memref<3x8x1xf32, #tpu.memory_space<vmem>>, vector<3x8x1xf32>
      tpu.vector_store %arg7[%c0_28, %c0_29, %c0_30], %29 {strides = array<i32>} : memref<3x8x1xf32, #tpu.memory_space<vmem>>, vector<3x8x1xf32>,
    } else {
    }
    %3 = tpu.iota {dimensions = array<i32: 2>} : vector<3x8x24x1xi32>
    %c24_i32 = arith.constant 24 : i32
    %4 = arith.muli %arg1, %c24_i32 : i32
    %5 = vector.broadcast %4 : i32 to vector<3x8x24x1xi32>
    %6 = arith.addi %3, %5 : vector<3x8x24x1xi32>
    %c0 = arith.constant 0 : index
    %c0_1 = arith.constant 0 : index
    %c0_2 = arith.constant 0 : index
    %c0_3 = arith.constant 0 : index
    %7 = vector.load %arg3[%c0, %c0_1, %c0_2, %c0_3] : memref<3x8x1x1xi32, #tpu.memory_space<vmem>>, vector<3x8x1x1xi32>
    %8 = vector.broadcast %7 : vector<3x8x1x1xi32> to vector<3x8x24x1xi32>
    %9 = arith.cmpi slt, %6, %8 : vector<3x8x24x1xi32>
    %10 = arith.extui %9 : vector<3x8x24x1xi1> to vector<3x8x24x1xi32>
    %11 = arith.sitofp %10 : vector<3x8x24x1xi32> to vector<3x8x24x1xf32>
    %c0_4 = arith.constant 0 : index
    %c0_5 = arith.constant 0 : index
    %c0_6 = arith.constant 0 : index
    %c0_7 = arith.constant 0 : index
    %12 = vector.load %arg2[%c0_4, %c0_5, %c0_6, %c0_7] : memref<3x8x24x96xbf16, #tpu.memory_space<vmem>>, vector<3x8x24x96xbf16>
    %13 = arith.extf %12 : vector<3x8x24x96xbf16> to vector<3x8x24x96xf32>
    %c0_8 = arith.constant 0 : index
    %c0_9 = arith.constant 0 : index
    %c0_10 = arith.constant 0 : index
    %14 = vector.load %arg6[%c0_8, %c0_9, %c0_10] : memref<3x8x96xf32, #tpu.memory_space<vmem>>, vector<3x8x96xf32>
    %15 = vector.broadcast %11 : vector<3x8x24x1xf32> to vector<3x8x24x96xf32>
    %16 = arith.mulf %13, %15 : vector<3x8x24x96xf32>
    %cst = arith.constant dense<0.000000e+00> : vector<3x8x96xf32>
    %17 = vector.multi_reduction <add>, %16, %cst [2] : vector<3x8x24x96xf32> to vector<3x8x96xf32>
    %18 = arith.addf %14, %17 : vector<3x8x96xf32>
    %c0_11 = arith.constant 0 : index
    %c0_12 = arith.constant 0 : index
    %c0_13 = arith.constant 0 : index
    %19 = vector.load %arg6[%c0_11, %c0_12, %c0_13] : memref<3x8x96xf32, #tpu.memory_space<vmem>>, vector<3x8x96xf32>
    tpu.vector_store %arg6[%c0_11, %c0_12, %c0_13], %18 {strides = array<i32>} : memref<3x8x96xf32, #tpu.memory_space<vmem>>, vector<3x8x96xf32>,
    %c0_14 = arith.constant 0 : index
    %c0_15 = arith.constant 0 : index
    %c0_16 = arith.constant 0 : index
    %20 = vector.load %arg7[%c0_14, %c0_15, %c0_16] : memref<3x8x1xf32, #tpu.memory_space<vmem>>, vector<3x8x1xf32>
    %cst_17 = arith.constant dense<0.000000e+00> : vector<3x8x1xf32>
    %21 = vector.multi_reduction <add>, %11, %cst_17 [2] : vector<3x8x24x1xf32> to vector<3x8x1xf32>
    %22 = arith.addf %20, %21 : vector<3x8x1xf32>
    %c0_18 = arith.constant 0 : index
    %c0_19 = arith.constant 0 : index
    %c0_20 = arith.constant 0 : index
    %23 = vector.load %arg7[%c0_18, %c0_19, %c0_20] : memref<3x8x1xf32, #tpu.memory_space<vmem>>, vector<3x8x1xf32>
    tpu.vector_store %arg7[%c0_18, %c0_19, %c0_20], %22 {strides = array<i32>} : memref<3x8x1xf32, #tpu.memory_space<vmem>>, vector<3x8x1xf32>,
    %c0_i32_21 = arith.constant 0 : i32
    %24 = arith.cmpi eq, %arg1, %c0_i32_21 : i32
    %25 = arith.extui %24 : i1 to i32
    %c0_i32_22 = arith.constant 0 : i32
    %26 = arith.cmpi ne, %25, %c0_i32_22 : i32
    scf.if %26 {
      %c0_23 = arith.constant 0 : index
      %c0_24 = arith.constant 0 : index
      %c0_25 = arith.constant 0 : index
      %27 = vector.load %arg6[%c0_23, %c0_24, %c0_25] : memref<3x8x96xf32, #tpu.memory_space<vmem>>, vector<3x8x96xf32>
      %c0_26 = arith.constant 0 : index
      %c0_27 = arith.constant 0 : index
      %c0_28 = arith.constant 0 : index
      %28 = vector.load %arg7[%c0_26, %c0_27, %c0_28] : memref<3x8x1xf32, #tpu.memory_space<vmem>>, vector<3x8x1xf32>
      %cst_29 = arith.constant 9.99999971E-10 : f32
      %29 = vector.broadcast %cst_29 : f32 to vector<3x8x1xf32>
      %30 = arith.maximumf %28, %29 : vector<3x8x1xf32>
      %31 = vector.broadcast %30 : vector<3x8x1xf32> to vector<3x8x96xf32>
      %32 = arith.divf %27, %31 : vector<3x8x96xf32>
      %33 = vector.extract_strided_slice %32 {offsets = [0, 0, 0], sizes = [1, 8, 96], strides = [1, 1, 1]} : vector<3x8x96xf32> to vector<1x8x96xf32>
      %34 = vector.shape_cast %33 : vector<1x8x96xf32> to vector<8x96xf32>
      %35 = vector.extract_strided_slice %32 {offsets = [1, 0, 0], sizes = [1, 8, 96], strides = [1, 1, 1]} : vector<3x8x96xf32> to vector<1x8x96xf32>
      %36 = vector.shape_cast %35 : vector<1x8x96xf32> to vector<8x96xf32>
      %37 = vector.extract_strided_slice %32 {offsets = [2, 0, 0], sizes = [1, 8, 96], strides = [1, 1, 1]} : vector<3x8x96xf32> to vector<1x8x96xf32>
      %38 = vector.shape_cast %37 : vector<1x8x96xf32> to vector<8x96xf32>
      %39 = arith.mulf %34, %36 : vector<8x96xf32>
      %cst_30 = arith.constant dense<0.000000e+00> : vector<8xf32>
      %40 = vector.multi_reduction <add>, %39, %cst_30 [1] : vector<8x96xf32> to vector<8xf32>
      %41 = vector.shape_cast %40 : vector<8xf32> to vector<8x1xf32>
      %42 = arith.mulf %34, %38 : vector<8x96xf32>
      %cst_31 = arith.constant dense<0.000000e+00> : vector<8xf32>
      %43 = vector.multi_reduction <add>, %42, %cst_31 [1] : vector<8x96xf32> to vector<8xf32>
      %44 = vector.shape_cast %43 : vector<8xf32> to vector<8x1xf32>
      %45 = arith.subf %41, %44 : vector<8x1xf32>
      %c0_32 = arith.constant 0 : index
      %c0_33 = arith.constant 0 : index
      %46 = vector.load %arg4[%c0_32, %c0_33] : memref<8x1xf32, #tpu.memory_space<vmem>>, vector<8x1xf32>
      %47 = arith.subf %45, %46 : vector<8x1xf32>
      %48 = arith.mulf %47, %47 : vector<8x1xf32>
      %c0_34 = arith.constant 0 : index
      %c0_35 = arith.constant 0 : index
      %49 = vector.load %arg5[%c0_34, %c0_35] : memref<8x1xf32, #tpu.memory_space<vmem>>, vector<8x1xf32>
      tpu.vector_store %arg5[%c0_34, %c0_35], %48 {strides = array<i32>} : memref<8x1xf32, #tpu.memory_space<vmem>>, vector<8x1xf32>,
    } else {
    }
    return
  }
  func.func @transform_0(%arg0: i32, %arg1: i32) -> (i32, i32, i32, i32) {
    %c0_i32 = arith.constant 0 : i32
    %c0_i32_0 = arith.constant 0 : i32
    %c0_i32_1 = arith.constant 0 : i32
    return %c0_i32, %arg0, %arg1, %c0_i32_0 : i32, i32, i32, i32
  }
  func.func @transform_1(%arg0: i32, %arg1: i32) -> (i32, i32, i32, i32) {
    %c0_i32 = arith.constant 0 : i32
    %c0_i32_0 = arith.constant 0 : i32
    %c0_i32_1 = arith.constant 0 : i32
    %c0_i32_2 = arith.constant 0 : i32
    return %c0_i32, %arg0, %c0_i32_0, %c0_i32_1 : i32, i32, i32, i32
  }
  func.func @transform_2(%arg0: i32, %arg1: i32) -> (i32, i32) {
    %c0_i32 = arith.constant 0 : i32
    %c0_i32_0 = arith.constant 0 : i32
    return %arg0, %c0_i32 : i32, i32
  }
  func.func @transform_3(%arg0: i32, %arg1: i32) -> (i32, i32) {
    %c0_i32 = arith.constant 0 : i32
    %c0_i32_0 = arith.constant 0 : i32
    return %arg0, %c0_i32 : i32, i32
  }
}

</mosaic_0001>

<bundles_post_ra>
// kernel: tpu_custom_call.1
= control target key start
LH: loop header
LB: loop body
LE: loop exit
PB: predicated region body
PF: predicated region fallthrough
CT: control target
= control target key end

     0   :  { %8 = vsyncpa [#allocation5], 0  ;;  %s3578_s0 = inlined_call_operand.hbm [shape: bf16[3,16,24,96], index: 0, kind: input, shape index: {}]   ;;  %s3579_s1 = inlined_call_operand.vmem [shape: s32[3,16,1,1], index: 1, kind: input, shape index: {}]   ;;  %s3580_s2 = inlined_call_operand.vmem [shape: f32[16,1], index: 2, kind: input, shape index: {}]   ;;  %s3581_s3 = inlined_call_operand.vmem [shape: f32[16,1], index: 3, kind: output, shape index: {}]  }
   0x1   :  { %10 = vsyncpa [#allocation5 + $0x1], 0  ;;  %s2677_s12 = smov 0   ;;  %s2679_s13 = smov 0  }
   0x2   :  { %s2681_s14 = smov 0   ;;  %s2683_s15 = smov 0  }
   0x3   :  { %s2685_s16 = smov 0   ;;  %s2687_s17 = smov 0  }
   0x4 LB: > { %s2049_s18 = sadd.s32 4294967295, %s2647_s17   ;;  %s28_s19 = sadd.s32 1, %s2643_s16  ;;  %s2647_s17 = sphi %s2687_s17, %s16_s17   ;;  %s2643_s16 = sphi %s2685_s16, %s3599_s16   ;;  %s2639_s15 = sphi %s2683_s15, %s3598_s15   ;;  %s2635_s14 = sphi %s2681_s14, %s3597_s14   ;;  %s2631_s13 = sphi %s2679_s13, %s3596_s13   ;;  %s2627_s12 = sphi %s2677_s12, %s3595_s12  }
   0x5   : > { %p30_p0 = scmp.ge.s32.totalorder %s28_s19, 2  ;;  %s37_s20 = sadd.s32 1, %s2635_s14 }
   0x6   : > { %p44_p1 = scmp.ne.s32.totalorder %s2635_s14, %s2631_s13  ;;  %p45_p2 = scmp.eq.s32.totalorder %s2647_s17, 0 }
   0x7   : > { %s3601_s19 = smov (%p30_p0, %s28_s19), 0  ;;  %p50_p4 = scmp.ne.s32.totalorder %s2631_s13, %s2627_s12 }
   0x8   : > { %p2713_p3 = por %p45_p2, %p44_p1  ;;  %s32_s22 = ssub.s32 %s2643_s16, %s3601_s19 }
   0x9   : > { %p51_p5 = scmp.eq.s32.totalorder %s2049_s18, 0  ;;  %p35_p6 = scmp.eq.s32.totalorder %s32_s22, 0 }
   0xa   : > { %p2052_p8 = scmp.ge.s32.totalorder %s2647_s17, 2 }
   0xb   : > { %p2720_p7 = por %p51_p5, %p50_p4 }
   0xc   : > { %s2725_s24 = scalar_select %p35_p6, %s2635_s14, %s37_s20  }
   0xd   : > { %148 = sbr.rel (%p2052_p8) target bundleno = 39 (0x27), region = 16 }
  0x14   : > { %s2729_s25 = sand.u32 1, %s2635_s14   ;;  %s2340_s26 = smul.u32 1536, %s2643_s16 }
  0x15   : > { %s2339_s27 = smul.u32 288, %s2729_s25  ;;  %s2649_s28 = smov 3072  }
  0x16   : > { %2345 = sst [smem:[#allocation8]] (%p2713_p3), %s2649_s28  ;;  %s165_s5 = scalar_lea.hbm %s3578_s0, %s2340_s26 }
  0x17   : > { %s2344_s29 = scalar_select %p2713_p3, [#allocation0], [#allocation9] }
  0x18   : > { %s156_s7 = scalar_lea.vmem [#allocation4], %s2339_s27  ;;  %s2650_s9 = smov 1536  }
  0x19   : > { %s170_s6 = sld [smem:[%s2344_s29]]   ;;  %s178_s8 = sshll.u32 %s156_s7, 4  ;;  %s179_s8 = int_to_ptr.vmem [resolvable:$true] %s178_s8 }
  0x1a   : > { %2346 = sst [smem:[#allocation8 + $0x1]] (%p2713_p3), %s2650_s9  ;;  %s2651_s10 = smov 24  }
  0x1b   : > { %2347 = sst [smem:[#allocation8 + $0x2]] (%p2713_p3), %s2651_s10  ;;  %s2652_s11 = smov 64  }
  0x1c   : > { %2348 = sst [smem:[#allocation8 + $0x3]] (%p2713_p3), %s2652_s11  ;;  %s2653_s12 = smov 4  }
  0x1d   : > { %2349 = sst [smem:[#allocation8 + $0x4]] (%p2713_p3), %s2652_s11  ;;  %s153_s22 = scalar_lea.sflag [#allocation5], %s2729_s25 }
  0x1e   : > { %2350 = sst [smem:[#allocation8 + $0x5]] (%p2713_p3), %s2653_s12  ;;  %s2654_s26 = smov [#allocation7]  }
  0x1f   : > { %s2056_s18 = sshll.u32 %s170_s6, 26  ;;  %200 = sbr.rel (!%p2713_p3) target bundleno = 39 (0x27), region = 24 }
  0x20   : > { %s2057_s20 = sadd.s32 134217728, %s2056_s18  ;;  %s2341_s27 = smul.u32 (%p2713_p3), 24, %s2729_s25 }
  0x21   : > { %2351 = dma.general (%p2713_p3), %s165_s5, 4608, %s179_s8, %s153_s22, %s2654_s26, [#allocation8], %s2057_s20, 0  }
  0x22   : > { %s2058_s28 = sshll.u32 (%p2713_p3), %s2643_s16, 3  ;;  %s204_s6 = scalar_lea.vmem (%p2713_p3), [#allocation6], %s2341_s27 }
  0x23   : > { %s206_s4 = scalar_lea.vmem (%p2713_p3), %s3579_s1, %s2058_s28 }
  0x24   : > { %v238_v0 = vld [vmem:[%s206_s4] sm:$0xff] (%p2713_p3)  ;;  %v240_v1 = vld [vmem:[%s206_s4 + $0x10] sm:$0xff] (%p2713_p3) }
  0x25   : > { %v242_v2 = vld [vmem:[%s206_s4 + $0x20] sm:$0xff] (%p2713_p3)  ;;  %239 = vst [vmem:[%s204_s6] sm:$0xff] (%p2713_p3), %v238_v0  ;;  %241 = vst [vmem:[%s204_s6 + $0x8] sm:$0xff] (%p2713_p3), %v240_v1 }
  0x26   : > { %243 = vst [vmem:[%s204_s6 + $0x10] sm:$0xff] %v242_v2 }
  0x27 PF: > { %p2059_p9 = scmp.ge.s32.totalorder %s2647_s17, 1  ;;  %p255_p10 = scmp.lt.s32.totalorder %s2647_s17, 3 }
  0x29   : > { %p256_p11 = pnand %p2059_p9, %p255_p10 }
  0x2a   : > { %s261_s21 = sand.u32 (!%p256_p11), 1, %s2631_s13  }
  0x2b   : > { %259 = sbr.rel (%p256_p11) target bundleno = 487 (0x1e7), region = 66  ;;  %s262_s5 = scalar_lea.sflag (!%p256_p11), [#allocation5], %s261_s21 }
  0x2c   : > { %s2342_s25 = smul.u32 (!%p256_p11), 288, %s261_s21 }
  0x2e   : > { %s2763_s7 = scalar_lea.vmem (!%p256_p11), [#allocation4], %s2342_s25 }
  0x32   : > { %2622 = dma.done.wait (%p2720_p7), %s262_s5, 4608  }
  0x33   : > { %2624 = vsyncadd (%p2720_p7), %s262_s5, 4294962688  ;;  %s2343_s8 = smul.u32 24, %s261_s21  ;;  %vm321_vm0 = vcmask 7168   ;;  %v325_v3 = vlaneseq  ;;  %v2655_v4 = vmov 0   ;;  %v2656_v5 = vmov 0.0   ;;  %p305_p12 = scmp.lt.s32.totalorder %s2639_s15, 1 }
  0x34   : > { %2420 = vset.pattern.permute.xlu1 %v2655_v4  ;;  %2409 = vset.pattern.permute.xlu0 %v2655_v4  ;;  %322 = vst.msk [vmem:[#allocation3] sm:$0xff] %vm321_vm0, %v2656_v5  ;;  %323 = vst.msk [vmem:[#allocation3 + $0x8] sm:$0xff] %vm321_vm0, %v2656_v5  ;;  %vm1538_vm13 = vcmask 1041409  }
  0x35   : > { %324 = vst.msk [vmem:[#allocation3 + $0x10] sm:$0xff] %vm321_vm0, %v2656_v5  ;;  %v2775_v6 = vshrl.u32 %v325_v3, 7  ;;  %s2783_s23 = scalar_lea.vmem [#allocation6], %s2343_s8  ;;  %s3603_s15 = smov (!%p305_p12, %s2639_s15), 1 }
  0x36   : > { %v2063_v9 = vld [vmem:[%s2783_s23 + $0x1] ss:$0 sm:$0xff]  ;;  %v2062_v10 = vld [vmem:[%s2783_s23] ss:$0 sm:$0xff]  ;;  %v2064_v11 = vld [vmem:[%s2783_s23 + $0x2] ss:$0 sm:$0xff] }
  0x37   : > { %v2778_v7 = vadd.s32 8, %v2775_v6  ;;  %v2781_v8 = vadd.s32 16, %v2775_v6  ;;  %vm457_vm3 = vcmp.lt.s32.totalorder %v2775_v6, %v2063_v9  ;;  %vm454_vm4 = vcmp.lt.s32.totalorder %v2775_v6, %v2062_v10  ;;  %v2065_v25 = vld [vmem:[%s2783_s23 + $0x3] ss:$0 sm:$0xff]  ;;  %v2066_v43 = vld [vmem:[%s2783_s23 + $0x4] ss:$0 sm:$0xff] }
  0x38   : > { %v2089_v14 = vsel %vm457_vm3, 1.0, %v2656_v5  ;;  %v2086_v20 = vsel %vm454_vm4, 1.0, %v2656_v5  ;;  %vm460_vm6 = vcmp.lt.s32.totalorder %v2775_v6, %v2064_v11  ;;  %vm463_vm12 = vcmp.lt.s32.totalorder %v2775_v6, %v2065_v25  ;;  %v2825_v50 = vld [vmem:[%s2783_s23 + $0x5] ss:$0 sm:$0xff]  ;;  %s2060_s9 = sshll.u32 %s3603_s15, 3 }
  0x39   : > { %vm458_vm1 = vcmp.lt.s32.totalorder %v2778_v7, %v2063_v9  ;;  %vm459_vm2 = vcmp.lt.s32.totalorder %v2781_v8, %v2063_v9  ;;  %vm455_vm5 = vcmp.lt.s32.totalorder %v2778_v7, %v2062_v10  ;;  %v1590_v17 = vsel %vm321_vm0, %v2089_v14, 0.0  ;;  %s308_s12 = scalar_lea.vmem %s3580_s2, %s2060_s9  ;;  %s312_s22 = scalar_lea.vmem %s3581_s3, %s2060_s9 }
  0x3a   : > { %v2090_v12 = vsel %vm458_vm1, 1.0, %v2656_v5  ;;  %v2091_v13 = vsel %vm459_vm2, 1.0, %v2656_v5  ;;  %v2087_v21 = vsel %vm455_vm5, 1.0, %v2656_v5  ;;  %v1579_v24 = vsel %vm321_vm0, %v2086_v20, 0.0 }
  0x3b   : > { %v1593_v15 = vsel %vm321_vm0, %v2091_v13, 0.0  ;;  %v2421_v16 = vpack.i.bf16 %v2091_v13, %v2090_v12  ;;  %v1591_v18 = vsel %vm321_vm0, %v2090_v12, 0.0  ;;  %v1580_v22 = vsel %vm321_vm0, %v2087_v21, 0.0 }
  0x3c   : > { %v1592_v19 = vadd.f32 %v1591_v18, %v1590_v17  ;;  %v2410_v23 = vpack.i.bf16 %v2087_v21, %v2086_v20  ;;  %vm461_vm7 = vcmp.lt.s32.totalorder %v2778_v7, %v2064_v11  ;;  %v1581_v27 = vadd.f32 %v1580_v22, %v1579_v24 }
  0x3d   : > { %2422 = vperm.xlu1 %2420, %v2421_v16   ;;  %v2092_v28 = vsel %vm460_vm6, 1.0, %v2656_v5  ;;  %v2093_v29 = vsel %vm461_vm7, 1.0, %v2656_v5  ;;  %vm456_vm8 = vcmp.lt.s32.totalorder %v2781_v8, %v2062_v10  ;;  %vm464_vm9 = vcmp.lt.s32.totalorder %v2778_v7, %v2065_v25 }
  0x3e   : > { %v1594_v26 = vadd.f32 %v1593_v15, %v1592_v19  ;;  %2411 = vperm.xlu0 %2409, %v2410_v23   ;;  %v1602_v30 = vsel %vm321_vm0, %v2093_v29, 0.0  ;;  %v2426_v31 = vpack.i.bf16 %v2093_v29, %v2092_v28  ;;  %v1601_v32 = vsel %vm321_vm0, %v2092_v28, 0.0 }
  0x3f   : > { %v1603_v34 = vadd.f32 %v1602_v30, %v1601_v32  ;;  %v2088_v35 = vsel %vm456_vm8, 1.0, %v2656_v5  ;;  %vm465_vm10 = vcmp.lt.s32.totalorder %v2781_v8, %v2065_v25  ;;  %v2096_v38 = vsel %vm464_vm9, 1.0, %v2656_v5 }
  0x40   : > { %v1595_v33 = vrot.slane %v1594_v26, 4  ;;  %v2415_v36 = vpack.i.bf16 %v2089_v14, %v2088_v35  ;;  %v1582_v37 = vsel %vm321_vm0, %v2088_v35, 0.0  ;;  %v2097_v41 = vsel %vm465_vm10, 1.0, %v2656_v5  ;;  %v2069_v35 = vld [vmem:[%s2783_s23 + $0x7] ss:$0 sm:$0xff] }
  0x41   : > { %2427 = vperm.xlu1 %2420, %v2426_v31   ;;  %v1583_v40 = vadd.f32 %v1582_v37, %v1581_v27  ;;  %v1613_v42 = vsel %vm321_vm0, %v2096_v38, 0.0  ;;  %v1615_v44 = vsel %vm321_vm0, %v2097_v41, 0.0  ;;  %v2436_v45 = vpack.i.bf16 %v2097_v41, %v2096_v38 }
  0x42   : > { %v1596_v39 = vadd.f32 %v1595_v33, %v1594_v26  ;;  %2416 = vperm.xlu0 %2409, %v2415_v36   ;;  %vm462_vm11 = vcmp.lt.s32.totalorder %v2781_v8, %v2064_v11  ;;  %v2095_v49 = vsel %vm463_vm12, 1.0, %v2656_v5  ;;  %vm468_vm14 = vcmp.lt.s32.totalorder %v2781_v8, %v2066_v43  ;;  %v2840_v11 = vld [vmem:[%s2783_s23 + $0x6] ss:$0 sm:$0xff] }
  0x43   : > { %v1584_v47 = vrot.slane %v1583_v40, 4  ;;  %v2094_v48 = vsel %vm462_vm11, 1.0, %v2656_v5  ;;  %v1612_v51 = vsel %vm321_vm0, %v2095_v49, 0.0  ;;  %vm469_vm15 = vcmp.lt.s32.totalorder %v2775_v6, %v2825_v50 }
  0x44   : > { %v1597_v46 = vrot.slane %v1596_v39, 2  ;;  %v2431_v52 = vpack.i.bf16 %v2095_v49, %v2094_v48  ;;  %v1604_v53 = vsel %vm321_vm0, %v2094_v48, 0.0  ;;  %v1614_v56 = vadd.f32 %v1613_v42, %v1612_v51  ;;  %v2070_v49 = vld [vmem:[%s2783_s23 + $0x8] ss:$0 sm:$0xff] }
  0x45   : > { %2437 = vperm.xlu1 %2420, %v2436_v45   ;;  %v1585_v55 = vadd.f32 %v1584_v47, %v1583_v40  ;;  %v1605_v57 = vadd.f32 %v1604_v53, %v1603_v34  ;;  %v2100_v58 = vsel %vm468_vm14, 1.0, %v2656_v5  ;;  %vm466_vm1 = vcmp.lt.s32.totalorder %v2775_v6, %v2066_v43 }
  0x46   : > { %v1598_v54 = vadd.f32 %v1597_v46, %v1596_v39  ;;  %2432 = vperm.xlu0 %2409, %v2431_v52   ;;  %vm467_vm2 = vcmp.lt.s32.totalorder %v2778_v7, %v2066_v43  ;;  %v1616_v61 = vadd.f32 %v1615_v44, %v1614_v56  ;;  %vm1540_vm3 = vcmask 1042434  }
  0x47   : > { %v1586_v60 = vrot.slane %v1585_v55, 2  ;;  %v1606_v62 = vrot.slane %v1605_v57, 4  ;;  %v2101_v63 = vsel %vm469_vm15, 1.0, %v2656_v5  ;;  %v1626_v0 = vsel %vm321_vm0, %v2100_v58, 0.0 }
  0x48   : > { %v1599_v59 = vrot.slane %v1598_v54, 1  ;;  %v2098_v1 = vsel %vm466_vm1, 1.0, %v2656_v5  ;;  %v2099_v2 = vsel %vm467_vm2, 1.0, %v2656_v5  ;;  %v1617_v9 = vrot.slane %v1616_v61, 4 }
  0x49   : > { %v1587_v4 = vadd.f32 %v1586_v60, %v1585_v55  ;;  %v1607_v10 = vadd.f32 %v1606_v62, %v1605_v57  ;;  %vm1542_vm4 = vcmask 1043459   ;;  %v1634_v12 = vsel %vm321_vm0, %v2101_v63, 0.0  ;;  %v2882_v57 = vld [vmem:[%s2783_s23 + $0x9] ss:$0 sm:$0xff] }
  0x4a   : > { %v1600_v3 = vadd.f32 %v1599_v59, %v1598_v54  ;;  %v2446_v13 = vpack.i.bf16 %v2101_v63, %v2100_v58  ;;  %v1624_v14 = vsel %vm321_vm0, %v2099_v2, 0.0  ;;  %v2441_v15 = vpack.i.bf16 %v2099_v2, %v2098_v1 }
  0x4b   : > { %v1588_v16 = vrot.slane %v1587_v4, 1  ;;  %v1618_v17 = vadd.f32 %v1617_v9, %v1616_v61  ;;  %v1608_v18 = vrot.slane %v1607_v10, 2  ;;  %v1623_v19 = vsel %vm321_vm0, %v2098_v1, 0.0 }
  0x4c   : > { %2447 = vperm.xlu1 %2420, %v2446_v13   ;;  %v1625_v20 = vadd.f32 %v1624_v14, %v1623_v19  ;;  %2442 = vperm.xlu0 %2409, %v2441_v15   ;;  %vm472_vm5 = vcmp.lt.s32.totalorder %v2775_v6, %v2840_v11  ;;  %vm473_vm6 = vcmp.lt.s32.totalorder %v2778_v7, %v2840_v11  ;;  %vm317_vm7 = vcmask 785408   ;;  %v2895_v14 = vld [vmem:[%s2783_s23 + $0xa] ss:$0 sm:$0xff] }
  0x4d   : > { %v1589_v21 = vadd.f32 %v1588_v16, %v1587_v4  ;;  %v1619_v22 = vrot.slane %v1618_v17, 2  ;;  %v1609_v23 = vadd.f32 %v1608_v18, %v1607_v10  ;;  %v2104_v24 = vsel %vm472_vm5, 1.0, %v2656_v5  ;;  %318 = vst.msk [vmem:[#allocation2] sm:$0xff] %vm317_vm7, %v2656_v5  ;;  %319 = vst.msk [vmem:[#allocation2 + $0x8] sm:$0xff] %vm317_vm7, %v2656_v5 }
  0x4e   : > { %320 = vst.msk [vmem:[#allocation2 + $0x10] sm:$0xff] %vm317_vm7, %v2656_v5  ;;  %v1627_v25 = vadd.f32 %v1626_v0, %v1625_v20  ;;  %v2105_v26 = vsel %vm473_vm6, 1.0, %v2656_v5  ;;  %v1645_v27 = vsel %vm321_vm0, %v2104_v24, 0.0  ;;  %vm470_vm8 = vcmp.lt.s32.totalorder %v2778_v7, %v2825_v50 }
  0x4f   : > { %v1867_v28 = vsel %vm1538_vm13, %v1600_v3, %v1589_v21  ;;  %v1620_v29 = vadd.f32 %v1619_v22, %v1618_v17  ;;  %v1610_v30 = vrot.slane %v1609_v23, 1  ;;  %v1646_v31 = vsel %vm321_vm0, %v2105_v26, 0.0 }
  0x50   : > { %v1628_v32 = vrot.slane %v1627_v25, 4  ;;  %v2456_v33 = vpack.i.bf16 %v2105_v26, %v2104_v24  ;;  %v1647_v34 = vadd.f32 %v1646_v31, %v1645_v27  ;;  %vm471_vm9 = vcmp.lt.s32.totalorder %v2781_v8, %v2825_v50 }
  0x51   : > { %v1621_v36 = vrot.slane %v1620_v29, 1  ;;  %v1611_v37 = vadd.f32 %v1610_v30, %v1609_v23  ;;  %vm1544_vm10 = vcmask 1044484   ;;  %v2102_v38 = vsel %vm470_vm8, 1.0, %v2656_v5 }
  0x52   : > { %v2103_v39 = vsel %vm471_vm9, 1.0, %v2656_v5  ;;  %v1629_v40 = vadd.f32 %v1628_v32, %v1627_v25  ;;  %2457 = vperm.xlu1 %2420, %v2456_v33   ;;  %v1635_v43 = vsel %vm321_vm0, %v2102_v38, 0.0  ;;  %vm476_vm11 = vcmp.lt.s32.totalorder %v2778_v7, %v2069_v35 }
  0x53   : > { %v1637_v41 = vsel %vm321_vm0, %v2103_v39, 0.0  ;;  %v2451_v42 = vpack.i.bf16 %v2103_v39, %v2102_v38  ;;  %v1622_v44 = vadd.f32 %v1621_v36, %v1620_v29  ;;  %v1868_v45 = vsel %vm1540_vm3, %v1611_v37, %v1867_v28  ;;  %v2912_v36 = vld [vmem:[%s2783_s23 + $0x10] ss:$0 sm:$0xff] }
  0x54   : > { %v1636_v46 = vadd.f32 %v1635_v43, %v1634_v12  ;;  %v1630_v47 = vrot.slane %v1629_v40, 2  ;;  %vm477_vm12 = vcmp.lt.s32.totalorder %v2781_v8, %v2069_v35  ;;  %v2108_v48 = vsel %vm476_vm11, 1.0, %v2656_v5 }
  0x55   : > { %2452 = vperm.xlu0 %2409, %v2451_v42   ;;  %vm474_vm14 = vcmp.lt.s32.totalorder %v2781_v8, %v2840_v11  ;;  %v1869_v50 = vsel %vm1542_vm4, %v1622_v44, %v1868_v45  ;;  %v2109_v52 = vsel %vm477_vm12, 1.0, %v2656_v5  ;;  %v1657_v53 = vsel %vm321_vm0, %v2108_v48, 0.0 }
  0x56   : > { %v1638_v51 = vadd.f32 %v1637_v41, %v1636_v46  ;;  %v1631_v54 = vadd.f32 %v1630_v47, %v1629_v40  ;;  %v1659_v55 = vsel %vm321_vm0, %v2109_v52, 0.0  ;;  %v2466_v56 = vpack.i.bf16 %v2109_v52, %v2108_v48 }
  0x57   : > { %vm475_vm15 = vcmp.lt.s32.totalorder %v2775_v6, %v2069_v35  ;;  %v2106_v59 = vsel %vm474_vm14, 1.0, %v2656_v5  ;;  %vm480_vm1 = vcmp.lt.s32.totalorder %v2781_v8, %v2070_v49  ;;  %vm481_vm2 = vcmp.lt.s32.totalorder %v2775_v6, %v2882_v57 }
  0x58   : > { %v1639_v58 = vrot.slane %v1638_v51, 4  ;;  %v2107_v60 = vsel %vm475_vm15, 1.0, %v2656_v5  ;;  %v1632_v61 = vrot.slane %v1631_v54, 1  ;;  %2467 = vperm.xlu1 %2420, %v2466_v56   ;;  %v1648_v0 = vsel %vm321_vm0, %v2106_v59, 0.0 }
  0x59   : > { %v1656_v62 = vsel %vm321_vm0, %v2107_v60, 0.0  ;;  %v2461_v63 = vpack.i.bf16 %v2107_v60, %v2106_v59  ;;  %v1649_v3 = vadd.f32 %v1648_v0, %v1647_v34  ;;  %v2112_v9 = vsel %vm480_vm1, 1.0, %v2656_v5 }
  0x5a   : > { %v1640_v1 = vadd.f32 %v1639_v58, %v1638_v51  ;;  %v1658_v2 = vadd.f32 %v1657_v53, %v1656_v62  ;;  %v1633_v4 = vadd.f32 %v1632_v61, %v1631_v54  ;;  %v2113_v10 = vsel %vm481_vm2, 1.0, %v2656_v5  ;;  %v2933_v62 = vld [vmem:[%s2783_s23 + $0xb] ss:$0 sm:$0xff] }
  0x5b   : > { %2462 = vperm.xlu0 %2409, %v2461_v63   ;;  %vm478_vm5 = vcmp.lt.s32.totalorder %v2775_v6, %v2070_v49  ;;  %vm1546_vm6 = vcmask 1045509   ;;  %v1650_v13 = vrot.slane %v1649_v3, 4  ;;  %vm1548_vm8 = vcmask 1046534   ;;  %v2936_v63 = vld [vmem:[%s2783_s23 + $0x12] ss:$0 sm:$0xff] }
  0x5c   : > { %v1641_v11 = vrot.slane %v1640_v1, 2  ;;  %v1660_v12 = vadd.f32 %v1659_v55, %v1658_v2  ;;  %v1870_v15 = vsel %vm1544_vm10, %v1633_v4, %v1869_v50  ;;  %v2476_v16 = vpack.i.bf16 %v2113_v10, %v2112_v9  ;;  %v1575_v55 = vld [vmem:[#allocation3] sm:$0xff] }
  0x5d   : > { %v1670_v17 = vsel %vm321_vm0, %v2112_v9, 0.0  ;;  %vm479_vm9 = vcmp.lt.s32.totalorder %v2778_v7, %v2070_v49  ;;  %v1651_v20 = vadd.f32 %v1650_v13, %v1649_v3  ;;  %v2110_v21 = vsel %vm478_vm5, 1.0, %v2656_v5 }
  0x5e   : > { %v1642_v18 = vadd.f32 %v1641_v11, %v1640_v1  ;;  %v1661_v19 = vrot.slane %v1660_v12, 4  ;;  %vm1550_vm11 = vcmask 1047559   ;;  %2477 = vperm.xlu1 %2420, %v2476_v16   ;;  %v2111_v22 = vsel %vm479_vm9, 1.0, %v2656_v5  ;;  %v2079_v16 = vld [vmem:[%s2783_s23 + $0x11] ss:$0 sm:$0xff] }
  0x5f   : > { %v1667_v23 = vsel %vm321_vm0, %v2110_v21, 0.0  ;;  %vm484_vm12 = vcmp.lt.s32.totalorder %v2775_v6, %v2895_v14  ;;  %vm485_vm14 = vcmp.lt.s32.totalorder %v2778_v7, %v2895_v14  ;;  %v1652_v26 = vrot.slane %v1651_v20, 2 }
  0x60   : > { %v1643_v24 = vrot.slane %v1642_v18, 1  ;;  %v1662_v25 = vadd.f32 %v1661_v19, %v1660_v12  ;;  %v1668_v27 = vsel %vm321_vm0, %v2111_v22, 0.0  ;;  %v2471_v28 = vpack.i.bf16 %v2111_v22, %v2110_v21 }
  0x61   : > { %v1669_v29 = vadd.f32 %v1668_v27, %v1667_v23  ;;  %v2116_v30 = vsel %vm484_vm12, 1.0, %v2656_v5  ;;  %v2117_v31 = vsel %vm485_vm14, 1.0, %v2656_v5  ;;  %v1653_v34 = vadd.f32 %v1652_v26, %v1651_v20  ;;  %v2958_v26 = vld [vmem:[%s2783_s23 + $0x13] ss:$0 sm:$0xff] }
  0x62   : > { %v1644_v32 = vadd.f32 %v1643_v24, %v1642_v18  ;;  %v1663_v33 = vrot.slane %v1662_v25, 2  ;;  %v1678_v35 = vsel %vm321_vm0, %v2113_v10, 0.0  ;;  %2472 = vperm.xlu0 %2409, %v2471_v28   ;;  %v1690_v38 = vsel %vm321_vm0, %v2117_v31, 0.0 }
  0x63   : > { %v1671_v37 = vadd.f32 %v1670_v17, %v1669_v29  ;;  %v2486_v39 = vpack.i.bf16 %v2117_v31, %v2116_v30  ;;  %vm482_vm15 = vcmp.lt.s32.totalorder %v2778_v7, %v2882_v57  ;;  %v1654_v42 = vrot.slane %v1653_v34, 1 }
  0x64   : > { %v1871_v40 = vsel %vm1546_vm6, %v1644_v32, %v1870_v15  ;;  %v1664_v41 = vadd.f32 %v1663_v33, %v1662_v25  ;;  %v1689_v43 = vsel %vm321_vm0, %v2116_v30, 0.0  ;;  %vm483_vm1 = vcmp.lt.s32.totalorder %v2781_v8, %v2882_v57 }
  0x65   : > { %v1672_v44 = vrot.slane %v1671_v37, 4  ;;  %2487 = vperm.xlu1 %2420, %v2486_v39   ;;  %v2114_v45 = vsel %vm482_vm15, 1.0, %v2656_v5  ;;  %vm502_vm2 = vcmp.lt.s32.totalorder %v2775_v6, %v2912_v36  ;;  %v1655_v47 = vadd.f32 %v1654_v42, %v1653_v34 }
  0x66   : > { %v1665_v46 = vrot.slane %v1664_v41, 1  ;;  %v2115_v48 = vsel %vm483_vm1, 1.0, %v2656_v5  ;;  %v1679_v49 = vsel %vm321_vm0, %v2114_v45, 0.0  ;;  %vm503_vm5 = vcmp.lt.s32.totalorder %v2778_v7, %v2912_v36 }
  0x67   : > { %v1673_v50 = vadd.f32 %v1672_v44, %v1671_v37  ;;  %v1681_v51 = vsel %vm321_vm0, %v2115_v48, 0.0  ;;  %v2481_v52 = vpack.i.bf16 %v2115_v48, %v2114_v45  ;;  %v1680_v53 = vadd.f32 %v1679_v49, %v1678_v35 }
  0x68   : > { %v1666_v54 = vadd.f32 %v1665_v46, %v1664_v41  ;;  %v1872_v56 = vsel %vm1548_vm8, %v1655_v47, %v1871_v40  ;;  %v2134_v57 = vsel %vm502_vm2, 1.0, %v2656_v5  ;;  %v1691_v59 = vadd.f32 %v1690_v38, %v1689_v43  ;;  %v2972_v41 = vld [vmem:[%s2783_s23 + $0xc] ss:$0 sm:$0xff] }
  0x69   : > { %v1674_v58 = vrot.slane %v1673_v50, 2  ;;  %v1682_v60 = vadd.f32 %v1681_v51, %v1680_v53  ;;  %2482 = vperm.xlu0 %2409, %v2481_v52   ;;  %v2135_v61 = vsel %vm503_vm5, 1.0, %v2656_v5  ;;  %v1755_v2 = vsel %vm321_vm0, %v2134_v57, 0.0 }
  0x6a   : > { %v1873_v0 = vsel %vm1550_vm11, %v1666_v54, %v1872_v56  ;;  %v2496_v1 = vpack.i.bf16 %v2135_v61, %v2134_v57  ;;  %vm486_vm9 = vcmp.lt.s32.totalorder %v2781_v8, %v2895_v14  ;;  %v1756_v10 = vsel %vm321_vm0, %v2135_v61, 0.0 }
  0x6b   : > { %v1891_v3 = vadd.f32 %v1873_v0, %v1575_v55  ;;  %v1675_v4 = vadd.f32 %v1674_v58, %v1673_v50  ;;  %v1683_v9 = vrot.slane %v1682_v60, 4  ;;  %vm487_vm12 = vcmp.lt.s32.totalorder %v2775_v6, %v2933_v62 }
  0x6c   : > { %2497 = vperm.xlu1 %2420, %v2496_v1   ;;  %v2118_v11 = vsel %vm486_vm9, 1.0, %v2656_v5  ;;  %vm508_vm14 = vcmp.lt.s32.totalorder %v2775_v6, %v2936_v63  ;;  %vm509_vm15 = vcmp.lt.s32.totalorder %v2778_v7, %v2936_v63  ;;  %v2119_v14 = vsel %vm487_vm12, 1.0, %v2656_v5 }
  0x6d   : > { %1894 = vst.msk [vmem:[#allocation3] sm:$0xff] %vm321_vm0, %v1891_v3  ;;  %v1676_v12 = vrot.slane %v1675_v4, 1  ;;  %v1684_v13 = vadd.f32 %v1683_v9, %v1682_v60  ;;  %v1692_v15 = vsel %vm321_vm0, %v2118_v11, 0.0  ;;  %v2491_v17 = vpack.i.bf16 %v2119_v14, %v2118_v11  ;;  %v2999_v9 = vld [vmem:[%s2783_s23 + $0xd] ss:$0 sm:$0xff] }
  0x6e   : > { %v1693_v18 = vadd.f32 %v1692_v15, %v1691_v59  ;;  %v2140_v19 = vsel %vm508_vm14, 1.0, %v2656_v5  ;;  %v1757_v21 = vadd.f32 %v1756_v10, %v1755_v2  ;;  %v2141_v22 = vsel %vm509_vm15, 1.0, %v2656_v5 }
  0x6f   : > { %v1685_v20 = vrot.slane %v1684_v13, 2  ;;  %v1677_v23 = vadd.f32 %v1676_v12, %v1675_v4  ;;  %2492 = vperm.xlu0 %2409, %v2491_v17   ;;  %v2506_v25 = vpack.i.bf16 %v2141_v22, %v2140_v19  ;;  %vm505_vm1 = vcmp.lt.s32.totalorder %v2775_v6, %v2079_v16 }
  0x70   : > { %v1694_v24 = vrot.slane %v1693_v18, 4  ;;  %v1777_v28 = vsel %vm321_vm0, %v2140_v19, 0.0  ;;  %vm506_vm2 = vcmp.lt.s32.totalorder %v2778_v7, %v2079_v16  ;;  %v2137_v29 = vsel %vm505_vm1, 1.0, %v2656_v5 }
  0x71   : > { %v1686_v27 = vadd.f32 %v1685_v20, %v1684_v13  ;;  %2507 = vperm.xlu1 %2420, %v2506_v25   ;;  %v2138_v31 = vsel %vm506_vm2, 1.0, %v2656_v5  ;;  %v1766_v32 = vsel %vm321_vm0, %v2137_v29, 0.0  ;;  %vm507_vm5 = vcmp.lt.s32.totalorder %v2781_v8, %v2079_v16  ;;  %v3005_v13 = vld [vmem:[%s2783_s23 + $0x14] ss:$0 sm:$0xff] }
  0x72   : > { %v1695_v30 = vadd.f32 %v1694_v24, %v1693_v18  ;;  %v1767_v34 = vsel %vm321_vm0, %v2138_v31, 0.0  ;;  %v2501_v35 = vpack.i.bf16 %v2138_v31, %v2137_v29  ;;  %vm511_vm9 = vcmp.lt.s32.totalorder %v2775_v6, %v2958_v26 }
  0x73   : > { %v1687_v33 = vrot.slane %v1686_v27, 1  ;;  %v1768_v38 = vadd.f32 %v1767_v34, %v1766_v32  ;;  %v2139_v39 = vsel %vm507_vm5, 1.0, %v2656_v5  ;;  %v2143_v40 = vsel %vm511_vm9, 1.0, %v2656_v5 }
  0x74   : > { %v1696_v37 = vrot.slane %v1695_v30, 2  ;;  %v1778_v43 = vsel %vm321_vm0, %v2141_v22, 0.0  ;;  %2502 = vperm.xlu0 %2409, %v2501_v35   ;;  %v2516_v44 = vpack.i.bf16 %v2143_v40, %v2139_v39  ;;  %v1769_v45 = vsel %vm321_vm0, %v2139_v39, 0.0 }
  0x75   : > { %v1688_v42 = vadd.f32 %v1687_v33, %v1686_v27  ;;  %v1770_v47 = vadd.f32 %v1769_v45, %v1768_v38  ;;  %vm488_vm12 = vcmp.lt.s32.totalorder %v2778_v7, %v2933_v62  ;;  %vm504_vm14 = vcmp.lt.s32.totalorder %v2781_v8, %v2912_v36  ;;  %v3020_v27 = vld [vmem:[%s2783_s23 + $0x15] ss:$0 sm:$0xff] }
  0x76   : > { %v1697_v46 = vadd.f32 %v1696_v37, %v1695_v30  ;;  %2517 = vperm.xlu1 %2420, %v2516_v44   ;;  %v2120_v49 = vsel %vm488_vm12, 1.0, %v2656_v5  ;;  %v2136_v50 = vsel %vm504_vm14, 1.0, %v2656_v5  ;;  %vm491_vm15 = vcmp.lt.s32.totalorder %v2778_v7, %v2972_v41 }
  0x77   : > { %v1874_v48 = vsel %vm1538_vm13, %v1688_v42, %v1677_v23  ;;  %v1779_v51 = vadd.f32 %v1778_v43, %v1777_v28  ;;  %v1771_v52 = vrot.slane %v1770_v47, 4  ;;  %v1758_v53 = vsel %vm321_vm0, %v2136_v50, 0.0 }
  0x78   : > { %v2511_v54 = vpack.i.bf16 %v2136_v50, %v2120_v49  ;;  %v1759_v55 = vadd.f32 %v1758_v53, %v1757_v21  ;;  %vm510_vm1 = vcmp.lt.s32.totalorder %v2781_v8, %v2936_v63  ;;  %v1698_v36 = vrot.slane %v1697_v46, 1 }
  0x79   : > { %v1772_v56 = vadd.f32 %v1771_v52, %v1770_v47  ;;  %v2123_v57 = vsel %vm491_vm15, 1.0, %v2656_v5  ;;  %v2142_v58 = vsel %vm510_vm1, 1.0, %v2656_v5  ;;  %v1700_v59 = vsel %vm321_vm0, %v2119_v14, 0.0 }
  0x7a   : > { %2512 = vperm.xlu0 %2409, %v2511_v54   ;;  %v1760_v60 = vrot.slane %v1759_v55, 4  ;;  %v1780_v61 = vsel %vm321_vm0, %v2142_v58, 0.0  ;;  %v2526_v0 = vpack.i.bf16 %v2142_v58, %v2123_v57  ;;  %v1701_v2 = vsel %vm321_vm0, %v2120_v49, 0.0 }
  0x7b   : > { %v1773_v1 = vrot.slane %v1772_v56, 2  ;;  %v1781_v3 = vadd.f32 %v1780_v61, %v1779_v51  ;;  %vm490_vm2 = vcmp.lt.s32.totalorder %v2775_v6, %v2972_v41  ;;  %vm512_vm5 = vcmp.lt.s32.totalorder %v2778_v7, %v2958_v26 }
  0x7c   : > { %v1761_v63 = vadd.f32 %v1760_v60, %v1759_v55  ;;  %2527 = vperm.xlu1 %2420, %v2526_v0   ;;  %v2122_v4 = vsel %vm490_vm2, 1.0, %v2656_v5  ;;  %v1699_v10 = vadd.f32 %v1698_v36, %v1697_v46  ;;  %v2144_v12 = vsel %vm512_vm5, 1.0, %v2656_v5  ;;  %v3041_v46 = vld [vmem:[%s2783_s23 + $0xe] ss:$0 sm:$0xff] }
  0x7d   : > { %v1782_v11 = vrot.slane %v1781_v3, 4  ;;  %vm489_vm9 = vcmp.lt.s32.totalorder %v2781_v8, %v2933_v62  ;;  %v1702_v15 = vadd.f32 %v1701_v2, %v1700_v59  ;;  %v1712_v16 = vsel %vm321_vm0, %v2123_v57, 0.0 }
  0x7e   : > { %v1762_v14 = vrot.slane %v1761_v63, 2  ;;  %v2521_v17 = vpack.i.bf16 %v2122_v4, %v2144_v12  ;;  %v1774_v18 = vadd.f32 %v1773_v1, %v1772_v56  ;;  %v1711_v20 = vsel %vm321_vm0, %v2122_v4, 0.0 }
  0x7f   : > { %v1783_v19 = vadd.f32 %v1782_v11, %v1781_v3  ;;  %vm493_vm12 = vcmp.lt.s32.totalorder %v2775_v6, %v2999_v9  ;;  %v2121_v22 = vsel %vm489_vm9, 1.0, %v2656_v5  ;;  %vm514_vm14 = vcmp.lt.s32.totalorder %v2775_v6, %v3005_v13 }
  0x80   : > { %v1763_v21 = vadd.f32 %v1762_v14, %v1761_v63  ;;  %2522 = vperm.xlu0 %2409, %v2521_v17   ;;  %v2125_v62 = vsel %vm493_vm12, 1.0, %v2656_v5  ;;  %v3016_v23 = vsel %vm1540_vm3, %v1699_v10, %v1874_v48  ;;  %v1788_v24 = vsel %vm321_vm0, %v2143_v40, 0.0  ;;  %v3066_v10 = vld [vmem:[%s2783_s23 + $0xf] ss:$0 sm:$0xff]  ;;  %v3074_v17 = vld [vmem:[%s2783_s23 + $0x16] ss:$0 sm:$0xff] }
  0x81   : > { %v2536_v25 = vpack.i.bf16 %v2125_v62, %v2121_v22  ;;  %v1789_v28 = vsel %vm321_vm0, %v2144_v12, 0.0  ;;  %v1703_v29 = vsel %vm321_vm0, %v2121_v22, 0.0  ;;  %vm515_vm15 = vcmp.lt.s32.totalorder %v2778_v7, %v3005_v13 }
  0x82   : > { %v2146_v30 = vsel %vm514_vm14, 1.0, %v2656_v5  ;;  %v1775_v31 = vrot.slane %v1774_v18, 1  ;;  %v3027_v32 = vadd.f32 %v1712_v16, %v1711_v20  ;;  %v1704_v33 = vadd.f32 %v1703_v29, %v1702_v15 }
  0x83   : > { %2537 = vperm.xlu1 %2420, %v2536_v25   ;;  %v2147_v34 = vsel %vm515_vm15, 1.0, %v2656_v5  ;;  %v1764_v35 = vrot.slane %v1763_v21, 1  ;;  %v1784_v37 = vrot.slane %v1783_v19, 2  ;;  %vm517_vm1 = vcmp.lt.s32.totalorder %v2775_v6, %v3020_v27 }
  0x84   : > { %v2531_v38 = vpack.i.bf16 %v2147_v34, %v2146_v30  ;;  %v1790_v39 = vadd.f32 %v1789_v28, %v1788_v24  ;;  %v1705_v40 = vrot.slane %v1704_v33, 4  ;;  %v1799_v42 = vsel %vm321_vm0, %v2146_v30, 0.0 }
  0x85   : > { %vm518_vm2 = vcmp.lt.s32.totalorder %v2778_v7, %v3020_v27  ;;  %v1800_v43 = vsel %vm321_vm0, %v2147_v34, 0.0  ;;  %v2149_v44 = vsel %vm517_vm1, 1.0, %v2656_v5  ;;  %vm494_vm5 = vcmp.lt.s32.totalorder %v2778_v7, %v2999_v9 }
  0x86   : > { %2532 = vperm.xlu0 %2409, %v2531_v38   ;;  %v2150_v45 = vsel %vm518_vm2, 1.0, %v2656_v5  ;;  %v1776_v47 = vadd.f32 %v1775_v31, %v1774_v18  ;;  %v1722_v48 = vsel %vm321_vm0, %v2125_v62, 0.0  ;;  %v1706_v49 = vadd.f32 %v1705_v40, %v1704_v33 }
  0x87   : > { %v2546_v50 = vpack.i.bf16 %v2150_v45, %v2149_v44  ;;  %v1765_v51 = vadd.f32 %v1764_v35, %v1763_v21  ;;  %v3044_v52 = vadd.f32 %v1784_v37, %v1783_v19  ;;  %vm513_vm9 = vcmp.lt.s32.totalorder %v2781_v8, %v2958_v26  ;;  %v2085_v37 = vld [vmem:[%s2783_s23 + $0x17] ss:$0 sm:$0xff] }
  0x88   : > { %v2126_v53 = vsel %vm494_vm5, 1.0, %v2656_v5  ;;  %v1707_v54 = vrot.slane %v1706_v49, 2  ;;  %v1801_v55 = vadd.f32 %v1800_v43, %v1799_v42  ;;  %v2145_v36 = vsel %vm513_vm9, 1.0, %v2656_v5 }
  0x89   : > { %2547 = vperm.xlu1 %2420, %v2546_v50   ;;  %vm497_vm12 = vcmp.lt.s32.totalorder %v2778_v7, %v3041_v46  ;;  %v1811_v56 = vsel %vm321_vm0, %v2150_v45, 0.0  ;;  %v1791_v57 = vsel %vm321_vm0, %v2145_v36, 0.0  ;;  %v2541_v58 = vpack.i.bf16 %v2145_v36, %v2126_v53 }
  0x8a   : > { %vm516_vm14 = vcmp.lt.s32.totalorder %v2781_v8, %v3005_v13  ;;  %v1708_v26 = vadd.f32 %v1707_v54, %v1706_v49  ;;  %v1810_v59 = vsel %vm321_vm0, %v2149_v44, 0.0  ;;  %v1792_v60 = vadd.f32 %v1791_v57, %v1790_v39 }
  0x8b   : > { %v1723_v61 = vsel %vm321_vm0, %v2126_v53, 0.0  ;;  %2542 = vperm.xlu0 %2409, %v2541_v58   ;;  %v2129_v0 = vsel %vm497_vm12, 1.0, %v2656_v5  ;;  %v2148_v1 = vsel %vm516_vm14, 1.0, %v2656_v5  ;;  %vm492_vm15 = vcmp.lt.s32.totalorder %v2781_v8, %v2972_v41 }
  0x8c   : > { %vm496_vm1 = vcmp.lt.s32.totalorder %v2775_v6, %v3041_v46  ;;  %v1709_v2 = vrot.slane %v1708_v26, 1  ;;  %v1793_v3 = vrot.slane %v1792_v60, 4  ;;  %v1802_v63 = vsel %vm321_vm0, %v2148_v1, 0.0 }
  0x8d   : > { %v2556_v4 = vpack.i.bf16 %v2148_v1, %v2129_v0  ;;  %v1803_v11 = vadd.f32 %v1802_v63, %v1801_v55  ;;  %v2124_v12 = vsel %vm492_vm15, 1.0, %v2656_v5  ;;  %v2128_v13 = vsel %vm496_vm1, 1.0, %v2656_v5 }
  0x8e   : > { %vm495_vm2 = vcmp.lt.s32.totalorder %v2781_v8, %v2999_v9  ;;  %v1794_v41 = vadd.f32 %v1793_v3, %v1792_v60  ;;  %v1724_v14 = vadd.f32 %v1723_v61, %v1722_v48  ;;  %v1734_v15 = vsel %vm321_vm0, %v2129_v0, 0.0 }
  0x8f   : > { %2557 = vperm.xlu1 %2420, %v2556_v4   ;;  %v2551_v16 = vpack.i.bf16 %v2128_v13, %v2124_v12  ;;  %v1710_v18 = vadd.f32 %v1709_v2, %v1708_v26  ;;  %v1804_v19 = vrot.slane %v1803_v11, 4  ;;  %v1714_v20 = vsel %vm321_vm0, %v2124_v12, 0.0 }
  0x90   : > { %vm499_vm5 = vcmp.lt.s32.totalorder %v2775_v6, %v3066_v10  ;;  %v1795_v21 = vrot.slane %v1794_v41, 2  ;;  %v1733_v22 = vsel %vm321_vm0, %v2128_v13, 0.0  ;;  %v1715_v9 = vadd.f32 %v1714_v20, %v3027_v32 }
  0x91   : > { %2552 = vperm.xlu0 %2409, %v2551_v16   ;;  %v2127_v62 = vsel %vm495_vm2, 1.0, %v2656_v5  ;;  %v1805_v24 = vadd.f32 %v1804_v19, %v1803_v11  ;;  %v2131_v25 = vsel %vm499_vm5, 1.0, %v2656_v5  ;;  %vm520_vm9 = vcmp.lt.s32.totalorder %v2775_v6, %v3074_v17 }
  0x92   : > { %v1725_v28 = vsel %vm321_vm0, %v2127_v62, 0.0  ;;  %v3087_v29 = vsel %vm1538_vm13, %v1776_v47, %v1765_v51  ;;  %v1786_v30 = vrot.slane %v3044_v52, 1  ;;  %v1716_v31 = vrot.slane %v1715_v9, 4 }
  0x93   : > { %v2566_v33 = vpack.i.bf16 %v2131_v25, %v2127_v62  ;;  %v1812_v34 = vadd.f32 %v1811_v56, %v1810_v59  ;;  %v1726_v32 = vadd.f32 %v1725_v28, %v1724_v14  ;;  %vm521_vm12 = vcmp.lt.s32.totalorder %v2778_v7, %v3074_v17 }
  0x94   : > { %v2152_v35 = vsel %vm520_vm9, 1.0, %v2656_v5  ;;  %v3094_v38 = vadd.f32 %v1795_v21, %v1794_v41  ;;  %v3096_v39 = vadd.f32 %v1734_v15, %v1733_v22  ;;  %v1717_v40 = vadd.f32 %v1716_v31, %v1715_v9  ;;  %v1903_v31 = vld [vmem:[#allocation3] sm:$0xff] }
  0x95   : > { %2567 = vperm.xlu1 %2420, %v2566_v33   ;;  %v2153_v42 = vsel %vm521_vm12, 1.0, %v2656_v5  ;;  %v1876_v43 = vsel %vm1542_vm4, %v1710_v18, %v3016_v23  ;;  %v1806_v44 = vrot.slane %v1805_v24, 2  ;;  %v1727_v45 = vrot.slane %v1726_v32, 4 }
  0x96   : > { %v2561_v47 = vpack.i.bf16 %v2153_v42, %v2152_v35  ;;  %v1718_v48 = vrot.slane %v1717_v40, 2  ;;  %v1744_v49 = vsel %vm321_vm0, %v2131_v25, 0.0  ;;  %v1821_v50 = vsel %vm321_vm0, %v2152_v35, 0.0 }
  0x97   : > { %vm523_vm14 = vcmp.lt.s32.totalorder %v2775_v6, %v2085_v37  ;;  %v1728_v51 = vadd.f32 %v1727_v45, %v1726_v32  ;;  %v1822_v53 = vsel %vm321_vm0, %v2153_v42, 0.0  ;;  %vm524_vm15 = vcmp.lt.s32.totalorder %v2778_v7, %v2085_v37 }
  0x98   : > { %2562 = vperm.xlu0 %2409, %v2561_v47   ;;  %v2155_v54 = vsel %vm523_vm14, 1.0, %v2656_v5  ;;  %v1797_v23 = vrot.slane %v3094_v38, 1  ;;  %v1719_v55 = vadd.f32 %v1718_v48, %v1717_v40  ;;  %v2156_v36 = vsel %vm524_vm15, 1.0, %v2656_v5 }
  0x99   : > { %v1832_v56 = vsel %vm321_vm0, %v2155_v54, 0.0  ;;  %v3110_v57 = vadd.f32 %v1806_v44, %v1805_v24  ;;  %v1729_v58 = vrot.slane %v1728_v51, 2  ;;  %v1833_v6 = vsel %vm321_vm0, %v2156_v36, 0.0 }
  0x9a   : > { %v2576_v26 = vpack.i.bf16 %v2156_v36, %v2155_v54  ;;  %v1720_v59 = vrot.slane %v1719_v55, 1  ;;  %v1823_v60 = vadd.f32 %v1822_v53, %v1821_v50  ;;  %vm500_vm1 = vcmp.lt.s32.totalorder %v2778_v7, %v3066_v10 }
  0x9b   : > { %vm519_vm2 = vcmp.lt.s32.totalorder %v2781_v8, %v3020_v27  ;;  %v1730_v61 = vadd.f32 %v1729_v58, %v1728_v51  ;;  %v1834_v0 = vadd.f32 %v1833_v6, %v1832_v56  ;;  %v2132_v1 = vsel %vm500_vm1, 1.0, %v2656_v5 }
  0x9c   : > { %2577 = vperm.xlu1 %2420, %v2576_v26   ;;  %v2151_v2 = vsel %vm519_vm2, 1.0, %v2656_v5  ;;  %v1721_v3 = vadd.f32 %v1720_v59, %v1719_v55  ;;  %v1745_v11 = vsel %vm321_vm0, %v2132_v1, 0.0  ;;  %vm501_vm5 = vcmp.lt.s32.totalorder %v2781_v8, %v3066_v10 }
  0x9d   : > { %v1813_v63 = vsel %vm321_vm0, %v2151_v2, 0.0  ;;  %v2571_v4 = vpack.i.bf16 %v2151_v2, %v2132_v1  ;;  %v1731_v12 = vrot.slane %v1730_v61, 1  ;;  %v1746_v41 = vadd.f32 %v1745_v11, %v1744_v49 }
  0x9e   : > { %v1814_v13 = vadd.f32 %v1813_v63, %v1812_v34  ;;  %v1877_v7 = vsel %vm1544_vm10, %v1721_v3, %v1876_v43  ;;  %vm525_vm9 = vcmp.lt.s32.totalorder %v2781_v8, %v2085_v37  ;;  %v2133_v27 = vsel %vm501_vm5, 1.0, %v2656_v5  ;;  %v1576_v3 = vld [vmem:[#allocation3 + $0x8] sm:$0xff]  ;;  %v1577_v63 = vld [vmem:[#allocation3 + $0x10] sm:$0xff] }
  0x9f   : > { %2572 = vperm.xlu0 %2409, %v2571_v4   ;;  %vm498_vm12 = vcmp.lt.s32.totalorder %v2781_v8, %v3041_v46  ;;  %v1732_v14 = vadd.f32 %v1731_v12, %v1730_v61  ;;  %v2157_v16 = vsel %vm525_vm9, 1.0, %v2656_v5  ;;  %v1747_v18 = vsel %vm321_vm0, %v2133_v27, 0.0 }
  0xa0   : > { %v1815_v15 = vrot.slane %v1814_v13, 4  ;;  %v1835_v19 = vsel %vm321_vm0, %v2157_v16, 0.0  ;;  %v2586_v20 = vpack.i.bf16 %v2157_v16, %v2133_v27  ;;  %v1748_v10 = vadd.f32 %v1747_v18, %v1746_v41  ;;  %v2161_v27 = vld [vmem:[%s2763_s7] sm:$0xff]   ;;  %v2306_v16 = vld [vmem:[%s2763_s7 + $0x18] sm:$0xff]  }
  0xa1   : > { %vm522_vm14 = vcmp.lt.s32.totalorder %v2781_v8, %v3074_v17  ;;  %v1878_v21 = vsel %vm1546_vm6, %v1732_v14, %v1877_v7  ;;  %v1836_v9 = vadd.f32 %v1835_v19, %v1834_v0  ;;  %v2130_v62 = vsel %vm498_vm12, 1.0, %v2656_v5  ;;  %v2305_v14 = vld [vmem:[%s2763_s7 + $0x10] sm:$0xff]  }
  0xa2   : > { %v1816_v22 = vadd.f32 %v1815_v15, %v1814_v13  ;;  %v1787_v46 = vadd.f32 %v1786_v30, %v3044_v52  ;;  %v1749_v24 = vrot.slane %v1748_v10, 4  ;;  %2587 = vperm.xlu1 %2420, %v2586_v20   ;;  %v2154_v25 = vsel %vm522_vm14, 1.0, %v2656_v5  ;;  %v2304_v20 = vld [vmem:[%s2763_s7 + $0x8] sm:$0xff]  }
  0xa3   : > { %v1736_v28 = vsel %vm321_vm0, %v2130_v62, 0.0  ;;  %v1837_v34 = vrot.slane %v1836_v9, 4  ;;  %v1824_v8 = vsel %vm321_vm0, %v2154_v25, 0.0  ;;  %v2581_v17 = vpack.i.bf16 %v2154_v25, %v2130_v62 }
  0xa4   : > { %v1817_v33 = vrot.slane %v1816_v22, 2  ;;  %v1808_v32 = vrot.slane %v3110_v57, 1  ;;  %v1750_v35 = vadd.f32 %v1749_v24, %v1748_v10  ;;  %v1825_v37 = vadd.f32 %v1824_v8, %v1823_v60 }
  0xa5   : > { %v1737_v40 = vadd.f32 %v1736_v28, %v3096_v39  ;;  %v1798_v52 = vadd.f32 %v1797_v23, %v3094_v38  ;;  %v1838_v42 = vadd.f32 %v1837_v34, %v1836_v9  ;;  %2582 = vperm.xlu0 %2409, %v2581_v17   ;;  %v1906_v5 = vmax.f32 %v1903_v31, 1e-09 }
  0xa6   : > { %v1818_v30 = vadd.f32 %v1817_v33, %v1816_v22  ;;  %v1882_v43 = vsel %vm1540_vm3, %v1787_v46, %v3087_v29  ;;  %v1751_v44 = vrot.slane %v1750_v35, 2  ;;  %v1826_v45 = vrot.slane %v1825_v37, 4  ;;  %v2308_v46 = vld [vmem:[%s2763_s7 + $0x28] sm:$0xff]  }
  0xa7   : > { %v1738_v47 = vrot.slane %v1737_v40, 4  ;;  %v1839_v49 = vrot.slane %v1838_v42, 2  ;;  %v1809_v50 = vadd.f32 %v1808_v32, %v3110_v57  ;;  %v1883_v39 = vsel %vm1542_vm4, %v1798_v52, %v1882_v43 }
  0xa8   : > { %v1819_v48 = vrot.slane %v1818_v30, 1  ;;  %v1752_v51 = vadd.f32 %v1751_v44, %v1750_v35  ;;  %v1827_v53 = vadd.f32 %v1826_v45, %v1825_v37  ;;  %v2162_v18 = vunpack.c.l.bf16 %v2161_v27 }
  0xa9   : > { %v1739_v54 = vadd.f32 %v1738_v47, %v1737_v40  ;;  %v1840_v38 = vadd.f32 %v1839_v49, %v1838_v42  ;;  %1911 = vperm.xlu0 %2409, %v1906_v5   ;;  %v1884_v29 = vsel %vm1544_vm10, %v1809_v50, %v1883_v39  ;;  %v2163_v19 = vunpack.c.h.bf16 %v2161_v27  ;;  %v2307_v42 = vld [vmem:[%s2763_s7 + $0x20] sm:$0xff]  }
  0xaa   : > { %v1828_v23 = vrot.slane %v1827_v53, 2  ;;  %v1820_v36 = vadd.f32 %v1819_v48, %v1818_v30  ;;  %v1753_v58 = vrot.slane %v1752_v51, 1  ;;  %v2170_v10 = vunpack.c.l.bf16 %v2305_v14 }
  0xab   : > { %v1740_v55 = vrot.slane %v1739_v54, 2  ;;  %v1841_v56 = vrot.slane %v1840_v38, 1  ;;  %v2174_v33 = vunpack.c.l.bf16 %v2306_v16  ;;  %v2175_v17 = vunpack.c.h.bf16 %v2306_v16 }
  0xac   : > { %v1829_v6 = vadd.f32 %v1828_v23, %v1827_v53  ;;  %v1885_v57 = vsel %vm1546_vm6, %v1820_v36, %v1884_v29  ;;  %v1754_v0 = vadd.f32 %v1753_v58, %v1752_v51  ;;  %v2166_v35 = vunpack.c.l.bf16 %v2304_v20  ;;  %v3165_v53 = vld [vmem:[%s2763_s7 + $0x38] sm:$0xff]  }
  0xad   : > { %v1741_v26 = vadd.f32 %v1740_v55, %v1739_v54  ;;  %v1842_v61 = vadd.f32 %v1841_v56, %v1840_v38  ;;  %v2167_v52 = vunpack.c.h.bf16 %v2304_v20  ;;  %v2182_v30 = vunpack.c.l.bf16 %v2308_v46 }
  0xae   : > { %v1830_v59 = vrot.slane %v1829_v6, 1  ;;  %v2183_v38 = vunpack.c.h.bf16 %v2308_v46  ;;  %v2178_v55 = vunpack.c.l.bf16 %v2307_v42 }
  0xaf   : > { %v1742_v60 = vrot.slane %v1741_v26, 1 }
  0xb0   : > { %v1831_v1 = vadd.f32 %v1830_v59, %v1829_v6 }
  0xb1   : > { %v1743_v2 = vadd.f32 %v1742_v60, %v1741_v26  ;;  %v2179_v26 = vunpack.c.h.bf16 %v2307_v42  ;;  %v2190_v60 = vunpack.c.l.bf16 %v3165_v53 }
  0xb2   : > { %v1886_v4 = vsel %vm1548_vm8, %v1831_v1, %v1885_v57  ;;  %v2191_v57 = vunpack.c.h.bf16 %v3165_v53 }
  0xb3   : > { %v1879_v11 = vsel %vm1548_vm8, %v1743_v2, %v1878_v21  ;;  %v1887_v12 = vsel %vm1550_vm11, %v1842_v61, %v1886_v4  ;;  %v2171_v21 = vunpack.c.h.bf16 %v2305_v14 }
  0xb4   : > { %v1880_v13 = vsel %vm1550_vm11, %v1754_v0, %v1879_v11  ;;  %v1893_v7 = vadd.f32 %v1887_v12, %v1577_v63  ;;  %v2309_v12 = vld [vmem:[%s2763_s7 + $0x30] sm:$0xff]  }
  0xb5   : > { %v1892_v41 = vadd.f32 %v1880_v13, %v1576_v3  ;;  %v3175_v13 = vld [vmem:[%s2763_s7 + $0x48] sm:$0xff]  }
  0xb6   : > { %1896 = vst.msk [vmem:[#allocation3 + $0x10] sm:$0xff] %vm321_vm0, %v1893_v7 }
  0xb7   : > { %1895 = vst.msk [vmem:[#allocation3 + $0x8] sm:$0xff] %vm321_vm0, %v1892_v41 }
  0xbc   : > { %v2423_v15 = vpop.permute.xlu1 %2422 }
  0xbd   : > { %v2425_v22 = vunpack.i.h.bf16 %v2423_v15  ;;  %v2424_v9 = vunpack.i.l.bf16 %v2423_v15  ;;  %v2412_v62 = vpop.permute.xlu0 %2411  ;;  %v1905_v25 = vld [vmem:[#allocation3 + $0x10] sm:$0xff] }
  0xbe   : > { %v1904_v24 = vld [vmem:[#allocation3 + $0x8] sm:$0xff]  ;;  %v2414_v28 = vunpack.i.h.bf16 %v2412_v62  ;;  %v2413_v31 = vunpack.i.l.bf16 %v2412_v62  ;;  %v1908_v8 = vmax.f32 %v1905_v25, 1e-09 }
  0xbf   : > { %v1907_v34 = vmax.f32 %v1904_v24, 1e-09  ;;  %v1182_v5 = vmul.f32 %v2425_v22, %v2171_v21  ;;  %v1181_v43 = vmul.f32 %v2424_v9, %v2170_v10  ;;  %v2186_v10 = vunpack.c.l.bf16 %v2309_v12 }
  0xc0   : > { %v2428_v32 = vpop.permute.xlu1 %2427  ;;  %v1178_v37 = vmul.f32 %v2414_v28, %v2163_v19  ;;  %v1177_v40 = vmul.f32 %v2413_v31, %v2162_v18  ;;  %1921 = vperm.xlu0 %2409, %v1908_v8   ;;  %v2187_v21 = vunpack.c.h.bf16 %v2309_v12  ;;  %v2198_v22 = vunpack.c.l.bf16 %v3175_v13  ;;  %v2311_v31 = vld [vmem:[%s2763_s7 + $0x40] sm:$0xff]   ;;  %v3208_v12 = vld [vmem:[%s2763_s7 + $0x78] sm:$0xff]  }
  0xc1   : > { %1916 = vperm.xlu1 %2420, %v1907_v34   ;;  %v2430_v44 = vunpack.i.h.bf16 %v2428_v32  ;;  %v2429_v45 = vunpack.i.l.bf16 %v2428_v32  ;;  %v2417_v47 = vpop.permute.xlu0 %2416  ;;  %v1264_v61 = vsel %vm317_vm7, %v1182_v5, 0.0  ;;  %v1262_v0 = vsel %vm317_vm7, %v1181_v43, 0.0  ;;  %v3186_v32 = vld [vmem:[%s2763_s7 + $0x58] sm:$0xff]  }
  0xc2   : > { %v1251_v48 = vsel %vm317_vm7, %v1178_v37, 0.0  ;;  %v1250_v49 = vsel %vm317_vm7, %v1177_v40, 0.0  ;;  %v2419_v50 = vunpack.i.h.bf16 %v2417_v47  ;;  %v2418_v51 = vunpack.i.l.bf16 %v2417_v47 }
  0xc3   : > { %v1184_v54 = vmul.f32 %v2430_v44, %v2175_v17  ;;  %v1183_v39 = vmul.f32 %v2429_v45, %v2174_v33  ;;  %v1252_v6 = vadd.f32 %v1251_v48, %v1250_v49  ;;  %v2199_v28 = vunpack.c.h.bf16 %v3175_v13  ;;  %v3190_v44 = vld [vmem:[%s2763_s7 + $0x50] sm:$0xff]  }
  0xc4   : > { %v2438_v23 = vpop.permute.xlu1 %2437  ;;  %v1180_v36 = vmul.f32 %v2419_v50, %v2167_v52  ;;  %v1179_v56 = vmul.f32 %v2418_v51, %v2166_v35  ;;  %v2194_v5 = vunpack.c.l.bf16 %v2311_v31  ;;  %v2195_v43 = vunpack.c.h.bf16 %v2311_v31 }
  0xc5   : > { %v2440_v58 = vunpack.i.h.bf16 %v2438_v23  ;;  %v2439_v29 = vunpack.i.l.bf16 %v2438_v23  ;;  %v2433_v59 = vpop.permute.xlu0 %2432  ;;  %v1273_v41 = vsel %vm317_vm7, %v1184_v54, 0.0  ;;  %v1272_v7 = vsel %vm317_vm7, %v1183_v39, 0.0  ;;  %v3195_v39 = vld [vmem:[%s2763_s7 + $0x68] sm:$0xff]  }
  0xc6   : > { %v1261_v1 = vsel %vm317_vm7, %v1180_v36, 0.0  ;;  %v1253_v2 = vsel %vm317_vm7, %v1179_v56, 0.0  ;;  %v2435_v11 = vunpack.i.h.bf16 %v2433_v59  ;;  %v2434_v14 = vunpack.i.l.bf16 %v2433_v59 }
  0xc7   : > { %v1263_v3 = vadd.f32 %v1262_v0, %v1261_v1  ;;  %v1254_v63 = vadd.f32 %v1253_v2, %v1252_v6  ;;  %v1187_v4 = vmul.f32 %v2439_v29, %v2182_v30  ;;  %v1188_v27 = vmul.f32 %v2440_v58, %v2183_v38  ;;  %v3203_v2 = vld [vmem:[%s2763_s7 + $0x60] sm:$0xff]  }
  0xc8   : > { %v1186_v19 = vmul.f32 %v2435_v11, %v2179_v26  ;;  %v1185_v20 = vmul.f32 %v2434_v14, %v2178_v55  ;;  %v1274_v9 = vadd.f32 %v1273_v41, %v1272_v7  ;;  %v2206_v49 = vunpack.c.l.bf16 %v3186_v32 }
  0xc9   : > { %v1265_v15 = vadd.f32 %v1264_v61, %v1263_v3  ;;  %v1255_v16 = vrot.slane %v1254_v63, 4  ;;  %v1284_v18 = vsel %vm317_vm7, %v1187_v4, 0.0  ;;  %v1286_v37 = vsel %vm317_vm7, %v1188_v27, 0.0 }
  0xca   : > { %v1283_v46 = vsel %vm317_vm7, %v1186_v19, 0.0  ;;  %v1275_v8 = vsel %vm317_vm7, %v1185_v20, 0.0  ;;  %v2207_v54 = vunpack.c.h.bf16 %v3186_v32  ;;  %v2202_v56 = vunpack.c.l.bf16 %v3190_v44 }
  0xcb   : > { %v1266_v62 = vrot.slane %v1265_v15, 4  ;;  %v2448_v24 = vpop.permute.xlu1 %2447  ;;  %v2443_v25 = vpop.permute.xlu0 %2442  ;;  %v1256_v33 = vadd.f32 %v1255_v16, %v1254_v63  ;;  %v1285_v34 = vadd.f32 %v1284_v18, %v1283_v46  ;;  %v1276_v40 = vadd.f32 %v1275_v8, %v1274_v9 }
  0xcc   : > { %v2449_v17 = vunpack.i.l.bf16 %v2448_v24  ;;  %v2445_v52 = vunpack.i.h.bf16 %v2443_v25  ;;  %v2444_v42 = vunpack.i.l.bf16 %v2443_v25  ;;  %v2450_v47 = vunpack.i.h.bf16 %v2448_v24 }
  0xcd   : > { %v1267_v35 = vadd.f32 %v1266_v62, %v1265_v15  ;;  %v1287_v30 = vadd.f32 %v1286_v37, %v1285_v34  ;;  %v1277_v45 = vrot.slane %v1276_v40, 4  ;;  %v1257_v50 = vrot.slane %v1256_v33, 2 }
  0xce   : > { %v1190_v48 = vmul.f32 %v2445_v52, %v2187_v21  ;;  %v1191_v51 = vmul.f32 %v2449_v17, %v2190_v60  ;;  %v1189_v53 = vmul.f32 %v2444_v42, %v2186_v10  ;;  %v2203_v26 = vunpack.c.h.bf16 %v3190_v44 }
  0xcf   : > { %v1268_v38 = vrot.slane %v1267_v35, 2  ;;  %v1288_v23 = vrot.slane %v1287_v30, 4  ;;  %v1278_v58 = vadd.f32 %v1277_v45, %v1276_v40  ;;  %v1192_v59 = vmul.f32 %v2450_v47, %v2191_v57 }
  0xd0   : > { %v1295_v55 = vsel %vm317_vm7, %v1190_v48, 0.0  ;;  %v1294_v29 = vsel %vm317_vm7, %v1189_v53, 0.0  ;;  %v2214_v1 = vunpack.c.l.bf16 %v3195_v39  ;;  %v1258_v3 = vadd.f32 %v1257_v50, %v1256_v33  ;;  %v3220_v50 = vld [vmem:[%s2763_s7 + $0x70] sm:$0xff]  }
  0xd1   : > { %v2458_v36 = vpop.permute.xlu1 %2457  ;;  %v1296_v60 = vadd.f32 %v1295_v55, %v1294_v29  ;;  %v1297_v63 = vsel %vm317_vm7, %v1191_v51, 0.0  ;;  %v2215_v11 = vunpack.c.h.bf16 %v3195_v39  ;;  %v1269_v13 = vadd.f32 %v1268_v38, %v1267_v35 }
  0xd2   : > { %v2460_v6 = vunpack.i.h.bf16 %v2458_v36  ;;  %v2459_v61 = vunpack.i.l.bf16 %v2458_v36  ;;  %v1289_v41 = vadd.f32 %v1288_v23, %v1287_v30  ;;  %v1279_v57 = vrot.slane %v1278_v58, 2 }
  0xd3   : > { %v1298_v7 = vadd.f32 %v1297_v63, %v1296_v60  ;;  %v2210_v15 = vunpack.c.l.bf16 %v3203_v2  ;;  %v2211_v16 = vunpack.c.h.bf16 %v3203_v2  ;;  %v1305_v18 = vsel %vm317_vm7, %v1192_v59, 0.0 }
  0xd4   : > { %v2453_v0 = vpop.permute.xlu0 %2452  ;;  %v1196_v14 = vmul.f32 %v2460_v6, %v2199_v28  ;;  %v1195_v20 = vmul.f32 %v2459_v61, %v2198_v22  ;;  %v2222_v21 = vunpack.c.l.bf16 %v3208_v12  ;;  %v1259_v9 = vrot.slane %v1258_v3, 1 }
  0xd5   : > { %v2455_v4 = vunpack.i.h.bf16 %v2453_v0  ;;  %v2454_v27 = vunpack.i.l.bf16 %v2453_v0  ;;  %v1299_v19 = vrot.slane %v1298_v7, 4  ;;  %v1270_v25 = vrot.slane %v1269_v13, 1 }
  0xd6   : > { %v1290_v31 = vrot.slane %v1289_v41, 2  ;;  %v1280_v8 = vadd.f32 %v1279_v57, %v1278_v58  ;;  %v1317_v17 = vsel %vm317_vm7, %v1196_v14, 0.0  ;;  %v1316_v37 = vsel %vm317_vm7, %v1195_v20, 0.0 }
  0xd7   : > { %v2468_v10 = vpop.permute.xlu1 %2467  ;;  %v1194_v62 = vmul.f32 %v2455_v4, %v2195_v43  ;;  %v1193_v46 = vmul.f32 %v2454_v27, %v2194_v5  ;;  %v1300_v33 = vadd.f32 %v1299_v19, %v1298_v7  ;;  %v1271_v44 = vadd.f32 %v1270_v25, %v1269_v13  ;;  %v3228_v13 = vld [vmem:[%s2763_s7 + $0xc0] sm:$0xff]  }
  0xd8   : > { %v2470_v24 = vunpack.i.h.bf16 %v2468_v10  ;;  %v2469_v34 = vunpack.i.l.bf16 %v2468_v10  ;;  %v1291_v45 = vadd.f32 %v1290_v31, %v1289_v41  ;;  %v1281_v51 = vrot.slane %v1280_v8, 1 }
  0xd9   : > { %v1306_v32 = vsel %vm317_vm7, %v1193_v46, 0.0  ;;  %v1301_v22 = vrot.slane %v1300_v33, 2  ;;  %v1308_v30 = vsel %vm317_vm7, %v1194_v62, 0.0  ;;  %v1260_v29 = vadd.f32 %v1259_v9, %v1258_v3 }
  0xda   : > { %v2463_v28 = vpop.permute.xlu0 %2462  ;;  %v1307_v40 = vadd.f32 %v1306_v32, %v1305_v18  ;;  %v1199_v52 = vmul.f32 %v2469_v34, %v2206_v49  ;;  %v1200_v42 = vmul.f32 %v2470_v24, %v2207_v54  ;;  %v1318_v49 = vadd.f32 %v1317_v17, %v1316_v37 }
  0xdb   : > { %v2465_v35 = vunpack.i.h.bf16 %v2463_v28  ;;  %v2464_v43 = vunpack.i.l.bf16 %v2463_v28  ;;  %v1302_v53 = vadd.f32 %v1301_v22, %v1300_v33  ;;  %v2223_v54 = vunpack.c.h.bf16 %v3208_v12  ;;  %v3237_v33 = vld [vmem:[%s2763_s7 + $0x80] sm:$0xff]  }
  0xdc   : > { %v1309_v47 = vadd.f32 %v1308_v30, %v1307_v40  ;;  %v1328_v48 = vsel %vm317_vm7, %v1199_v52, 0.0  ;;  %v1330_v6 = vsel %vm317_vm7, %v1200_v42, 0.0  ;;  %v2218_v59 = vunpack.c.l.bf16 %v3220_v50 }
  0xdd   : > { %v1198_v5 = vmul.f32 %v2465_v35, %v2203_v26  ;;  %v1197_v23 = vmul.f32 %v2464_v43, %v2202_v56  ;;  %v2478_v55 = vpop.permute.xlu1 %2477  ;;  %v1292_v60 = vrot.slane %v1291_v45, 1  ;;  %v1539_v56 = vsel %vm1538_vm13, %v1271_v44, %v1260_v29  ;;  %v3269_v29 = vld [vmem:[%s2763_s7 + $0xe0] sm:$0xff]  }
  0xde   : > { %v1310_v36 = vrot.slane %v1309_v47, 4  ;;  %v1282_v41 = vadd.f32 %v1281_v51, %v1280_v8  ;;  %v1303_v7 = vrot.slane %v1302_v53, 1  ;;  %v2480_v19 = vunpack.i.h.bf16 %v2478_v55 }
  0xdf   : > { %v1327_v38 = vsel %vm317_vm7, %v1198_v5, 0.0  ;;  %v1319_v26 = vsel %vm317_vm7, %v1197_v23, 0.0  ;;  %v2219_v10 = vunpack.c.h.bf16 %v3220_v50  ;;  %v2258_v9 = vunpack.c.l.bf16 %v3228_v13  ;;  %v3255_v50 = vld [vmem:[%s2763_s7 + $0xd8] sm:$0xff]  }
  0xe0   : > { %v1329_v58 = vadd.f32 %v1328_v48, %v1327_v38  ;;  %v1311_v61 = vadd.f32 %v1310_v36, %v1309_v47  ;;  %v1320_v63 = vadd.f32 %v1319_v26, %v1318_v49  ;;  %v2259_v62 = vunpack.c.h.bf16 %v3228_v13  ;;  %v3263_v49 = vld [vmem:[%s2763_s7 + $0xd0] sm:$0xff]  }
  0xe1   : > { %v2473_v4 = vpop.permute.xlu0 %2472  ;;  %v1293_v46 = vadd.f32 %v1292_v60, %v1291_v45  ;;  %v1541_v34 = vsel %vm1540_vm3, %v1282_v41, %v1539_v56  ;;  %v1304_v28 = vadd.f32 %v1303_v7, %v1302_v53  ;;  %v2479_v8 = vunpack.i.l.bf16 %v2478_v55  ;;  %v3260_v55 = vld [vmem:[%s2763_s7 + $0xc8] sm:$0xff]  }
  0xe2   : > { %v1331_v0 = vadd.f32 %v1330_v6, %v1329_v58  ;;  %v2475_v27 = vunpack.i.h.bf16 %v2473_v4  ;;  %v1312_v3 = vrot.slane %v1311_v61, 2  ;;  %v1321_v14 = vrot.slane %v1320_v63, 4  ;;  %v3272_v6 = vld [vmem:[%s2763_s7 + $0x88] sm:$0xff]  }
  0xe3   : > { %v2474_v18 = vunpack.i.l.bf16 %v2473_v4  ;;  %v1204_v52 = vmul.f32 %v2480_v19, %v2215_v11  ;;  %v2226_v5 = vunpack.c.l.bf16 %v3237_v33  ;;  %v1543_v43 = vsel %vm1542_vm4, %v1293_v46, %v1541_v34  ;;  %v3297_v34 = vld [vmem:[%s2763_s7 + $0x98] sm:$0xff]  }
  0xe4   : > { %v1332_v57 = vrot.slane %v1331_v0, 4  ;;  %v3231_v20 = vpop.permute.xlu1 %2487  ;;  %v1313_v24 = vadd.f32 %v1312_v3, %v1311_v61  ;;  %v1322_v31 = vadd.f32 %v1321_v14, %v1320_v63  ;;  %v1202_v17 = vmul.f32 %v2475_v27, %v2211_v16 }
  0xe5   : > { %v1201_v37 = vmul.f32 %v2474_v18, %v2210_v15  ;;  %v1545_v47 = vsel %vm1544_vm10, %v1304_v28, %v1543_v43  ;;  %v1203_v2 = vmul.f32 %v2479_v8, %v2214_v1  ;;  %v2227_v48 = vunpack.c.h.bf16 %v3237_v33  ;;  %v3285_v18 = vld [vmem:[%s2763_s7 + $0x90] sm:$0xff]   ;;  %v3314_v43 = vld [vmem:[%s2763_s7 + $0xa0] sm:$0xff]  }
  0xe6   : > { %v1333_v25 = vadd.f32 %v1332_v57, %v1331_v0  ;;  %v1314_v32 = vrot.slane %v1313_v24, 1  ;;  %v1323_v22 = vrot.slane %v1322_v31, 2  ;;  %v1339_v38 = vsel %vm317_vm7, %v1202_v17, 0.0  ;;  %v814_v0 = vld [vmem:[#allocation2] sm:$0xff] }
  0xe7   : > { %v1338_v23 = vsel %vm317_vm7, %v1201_v37, 0.0  ;;  %v1349_v1 = vsel %vm317_vm7, %v1204_v52, 0.0  ;;  %v2270_v61 = vunpack.c.l.bf16 %v3255_v50  ;;  %v2271_v56 = vunpack.c.h.bf16 %v3255_v50  ;;  %v3308_v37 = vld [vmem:[%s2763_s7 + $0x100] sm:$0xff]  }
  0xe8   : > { %v1334_v35 = vrot.slane %v1333_v25, 2  ;;  %v2483_v40 = vpop.permute.xlu0 %2482  ;;  %v1315_v16 = vadd.f32 %v1314_v32, %v1313_v24  ;;  %v1324_v45 = vadd.f32 %v1323_v22, %v1322_v31  ;;  %v1340_v63 = vadd.f32 %v1339_v38, %v1338_v23  ;;  %v3294_v31 = vld [vmem:[%s2763_s7 + $0xe8] sm:$0xff]   ;;  %v3305_v22 = vld [vmem:[%s2763_s7 + $0xf8] sm:$0xff]  }
  0xe9   : > { %v2485_v30 = vunpack.i.h.bf16 %v2483_v40  ;;  %v2484_v42 = vunpack.i.l.bf16 %v2483_v40  ;;  %v2263_v41 = vunpack.c.h.bf16 %v3260_v55  ;;  %v2266_v7 = vunpack.c.l.bf16 %v3263_v49  ;;  %v3326_v38 = vld [vmem:[%s2763_s7 + $0xa8] sm:$0xff]  }
  0xea   : > { %v1335_v44 = vadd.f32 %v1334_v35, %v1333_v25  ;;  %v1325_v53 = vrot.slane %v1324_v45, 1  ;;  %v1547_v39 = vsel %vm1546_vm6, %v1315_v16, %v1545_v47  ;;  %v2267_v3 = vunpack.c.h.bf16 %v3263_v49  ;;  %v3302_v35 = vld [vmem:[%s2763_s7 + $0xf0] sm:$0xff]  }
  0xeb   : > { %v1205_v15 = vmul.f32 %v2484_v42, %v2218_v59  ;;  %v3251_v11 = vpop.permute.xlu1 %2497  ;;  %v1206_v36 = vmul.f32 %v2485_v30, %v2219_v10  ;;  %v2275_v57 = vunpack.c.h.bf16 %v3269_v29  ;;  %v2230_v14 = vunpack.c.l.bf16 %v3272_v6 }
  0xec   : > { %v1336_v51 = vrot.slane %v1335_v44, 1  ;;  %v1326_v59 = vadd.f32 %v1325_v53, %v1324_v45  ;;  %v1341_v10 = vsel %vm317_vm7, %v1203_v2, 0.0  ;;  %v2262_v25 = vunpack.c.l.bf16 %v3260_v55 }
  0xed   : > { %v1350_v58 = vsel %vm317_vm7, %v1205_v15, 0.0  ;;  %v1352_v46 = vsel %vm317_vm7, %v1206_v36, 0.0  ;;  %v2490_v8 = vunpack.i.h.bf16 %v3231_v20  ;;  %v2489_v17 = vunpack.i.l.bf16 %v3231_v20 }
  0xee   : > { %v1337_v26 = vadd.f32 %v1336_v51, %v1335_v44  ;;  %v1351_v60 = vadd.f32 %v1350_v58, %v1349_v1  ;;  %v3275_v4 = vpop.permute.xlu0 %2492  ;;  %v1549_v27 = vsel %vm1548_vm8, %v1326_v59, %v1547_v39  ;;  %v1342_v40 = vadd.f32 %v1341_v10, %v1340_v63  ;;  %v3358_v58 = vld [vmem:[%s2763_s7 + $0x110] sm:$0xff]  }
  0xef   : > { %v2235_v52 = vunpack.c.h.bf16 %v3285_v18  ;;  %v2274_v30 = vunpack.c.l.bf16 %v3269_v29  ;;  %v2234_v42 = vunpack.c.l.bf16 %v3285_v18  ;;  %v2494_v20 = vunpack.i.l.bf16 %v3275_v4 }
  0xf0   : > { %v1551_v19 = vsel %vm1550_vm11, %v1337_v26, %v1549_v27  ;;  %v3290_v24 = vpop.permute.xlu1 %2507  ;;  %v1353_v32 = vadd.f32 %v1352_v46, %v1351_v60  ;;  %v2278_v44 = vunpack.c.l.bf16 %v3294_v31  ;;  %v2231_v45 = vunpack.c.h.bf16 %v3272_v6 }
  0xf1   : > { %v1569_v28 = vadd.f32 %v1551_v19, %v814_v0  ;;  %v2282_v2 = vunpack.c.l.bf16 %v3302_v35  ;;  %v2283_v15 = vunpack.c.h.bf16 %v3302_v35  ;;  %v1208_v23 = vmul.f32 %v2490_v8, %v2223_v54 }
  0xf2   : > { %v1207_v39 = vmul.f32 %v2489_v17, %v2222_v21  ;;  %v1354_v1 = vrot.slane %v1353_v32, 4  ;;  %v1343_v26 = vrot.slane %v1342_v40, 4  ;;  %v2279_v0 = vunpack.c.h.bf16 %v3294_v31  ;;  %v3342_v21 = vld [vmem:[%s2763_s7 + $0xb0] sm:$0xff]   ;;  %v3349_v17 = vld [vmem:[%s2763_s7 + $0x108] sm:$0xff]  }
  0xf3   : > { %1572 = vst.msk [vmem:[#allocation2] sm:$0xff] %vm317_vm7, %v1569_v28  ;;  %v2503_v16 = vpop.permute.xlu0 %2502  ;;  %v2500_v63 = vunpack.i.h.bf16 %v3251_v11  ;;  %v1209_v27 = vmul.f32 %v2494_v20, %v2226_v5  ;;  %v2286_v12 = vunpack.c.l.bf16 %v3305_v22  ;;  %v2499_v19 = vunpack.i.l.bf16 %v3251_v11 }
  0xf4   : > { %v2505_v59 = vunpack.i.h.bf16 %v2503_v16  ;;  %v2504_v60 = vunpack.i.l.bf16 %v2503_v16  ;;  %v1361_v5 = vsel %vm317_vm7, %v1208_v23, 0.0  ;;  %v1360_v20 = vsel %vm317_vm7, %v1207_v39, 0.0 }
  0xf5   : > { %v3332_v36 = vpop.permute.xlu1 %2517  ;;  %v1355_v16 = vadd.f32 %v1354_v1, %v1353_v32  ;;  %v2243_v54 = vunpack.c.h.bf16 %v3314_v43  ;;  %v1344_v51 = vadd.f32 %v1343_v26, %v1342_v40  ;;  %v1226_v8 = vmul.f32 %v2500_v63, %v2259_v62  ;;  %v3372_v26 = vld [vmem:[%s2763_s7 + $0x118] sm:$0xff]  }
  0xf6   : > { %v2519_v10 = vunpack.i.l.bf16 %v3332_v36  ;;  %v1229_v53 = vmul.f32 %v2505_v59, %v2266_v7  ;;  %v1228_v11 = vmul.f32 %v2504_v60, %v2263_v41  ;;  %v1363_v23 = vsel %vm317_vm7, %v1209_v27, 0.0 }
  0xf7   : > { %v1362_v39 = vadd.f32 %v1361_v5, %v1360_v20  ;;  %v1225_v40 = vmul.f32 %v2499_v19, %v2258_v9  ;;  %v2510_v7 = vunpack.i.h.bf16 %v3290_v24  ;;  %v1356_v62 = vrot.slane %v1355_v16, 2  ;;  %v3385_v20 = vld [vmem:[%s2763_s7 + $0xb8] sm:$0xff]  }
  0xf8   : > { %v1230_v41 = vmul.f32 %v2519_v10, %v2267_v3  ;;  %v2509_v59 = vunpack.i.l.bf16 %v3290_v24  ;;  %v1345_v27 = vrot.slane %v1344_v51, 2  ;;  %v1438_v9 = vsel %vm317_vm7, %v1229_v53, 0.0 }
  0xf9   : > { %v2513_v46 = vpop.permute.xlu0 %2512  ;;  %v1364_v13 = vadd.f32 %v1363_v23, %v1362_v39  ;;  %v1437_v19 = vsel %vm317_vm7, %v1228_v11, 0.0  ;;  %v1427_v49 = vsel %vm317_vm7, %v1226_v8, 0.0  ;;  %v2495_v3 = vunpack.i.h.bf16 %v3275_v4 }
  0xfa   : > { %v2515_v28 = vunpack.i.h.bf16 %v2513_v46  ;;  %v2302_v24 = vunpack.c.l.bf16 %v3372_v26  ;;  %v1426_v32 = vsel %vm317_vm7, %v1225_v40, 0.0  ;;  %v1232_v23 = vmul.f32 %v2510_v7, %v2271_v56 }
  0xfb   : > { %v3369_v1 = vpop.permute.xlu1 %2527  ;;  %v1440_v53 = vsel %vm317_vm7, %v1230_v41, 0.0  ;;  %v1357_v8 = vadd.f32 %v1356_v62, %v1355_v16  ;;  %v1231_v4 = vmul.f32 %v2509_v59, %v2270_v61  ;;  %v1439_v55 = vadd.f32 %v1438_v9, %v1437_v19 }
  0xfc   : > { %v1227_v10 = vmul.f32 %v2515_v28, %v2262_v25  ;;  %v2530_v11 = vunpack.i.h.bf16 %v3369_v1  ;;  %v2514_v25 = vunpack.i.l.bf16 %v2513_v46  ;;  %v1346_v28 = vadd.f32 %v1345_v27, %v1344_v51 }
  0xfd   : > { %v1365_v39 = vrot.slane %v1364_v13, 4  ;;  %v2254_v47 = vunpack.c.l.bf16 %v3385_v20  ;;  %v2291_v40 = vunpack.c.h.bf16 %v3308_v37  ;;  %v1428_v63 = vadd.f32 %v1427_v49, %v1426_v32 }
  0xfe   : > { %v1441_v56 = vadd.f32 %v1440_v53, %v1439_v55  ;;  %v1429_v7 = vsel %vm317_vm7, %v1227_v10, 0.0  ;;  %v2255_v41 = vunpack.c.h.bf16 %v3385_v20  ;;  %v1210_v50 = vmul.f32 %v2495_v3, %v2227_v48 }
  0xff   : > { %v2523_v5 = vpop.permute.xlu0 %2522  ;;  %v1449_v61 = vsel %vm317_vm7, %v1232_v23, 0.0  ;;  %v1233_v51 = vmul.f32 %v2530_v11, %v2274_v30  ;;  %v1358_v16 = vrot.slane %v1357_v8, 1  ;;  %v1448_v62 = vsel %vm317_vm7, %v1231_v4, 0.0 }
 0x100   : > { %v2520_v32 = vunpack.i.h.bf16 %v3332_v36  ;;  %v1211_v59 = vmul.f32 %v2514_v25, %v2230_v14  ;;  %v1347_v9 = vrot.slane %v1346_v28, 1  ;;  %v1366_v19 = vadd.f32 %v1365_v39, %v1364_v13 }
 0x101   : > { %v1430_v33 = vadd.f32 %v1429_v7, %v1428_v63  ;;  %v2529_v48 = vunpack.i.l.bf16 %v3369_v1  ;;  %v1442_v49 = vrot.slane %v1441_v56, 4  ;;  %v2524_v3 = vunpack.i.l.bf16 %v2523_v5 }
 0x102   : > { %v3394_v60 = vpop.permute.xlu1 %2537  ;;  %v2303_v10 = vunpack.c.h.bf16 %v3372_v26  ;;  %v1371_v23 = vsel %vm317_vm7, %v1210_v50, 0.0  ;;  %v1450_v53 = vadd.f32 %v1449_v61, %v1448_v62  ;;  %v1451_v36 = vsel %vm317_vm7, %v1233_v51, 0.0 }
 0x103   : > { %v2539_v46 = vunpack.i.l.bf16 %v3394_v60  ;;  %v2250_v14 = vunpack.c.l.bf16 %v3342_v21  ;;  %v1359_v13 = vadd.f32 %v1358_v16, %v1357_v8  ;;  %v1234_v1 = vmul.f32 %v2520_v32, %v2275_v57 }
 0x104   : > { %v1372_v63 = vsel %vm317_vm7, %v1211_v59, 0.0  ;;  %v2525_v4 = vunpack.i.h.bf16 %v2523_v5  ;;  %v1348_v6 = vadd.f32 %v1347_v9, %v1346_v28  ;;  %v1431_v55 = vrot.slane %v1430_v33, 4 }
 0x105   : > { %v2533_v27 = vpop.permute.xlu0 %2532  ;;  %v1212_v30 = vmul.f32 %v2539_v46, %v2231_v45  ;;  %v1367_v45 = vrot.slane %v1366_v19, 2  ;;  %v1214_v25 = vmul.f32 %v2529_v48, %v2235_v52  ;;  %v1443_v39 = vadd.f32 %v1442_v49, %v1441_v56 }
 0x106   : > { %v1452_v7 = vadd.f32 %v1451_v36, %v1450_v53  ;;  %v1235_v50 = vmul.f32 %v2524_v3, %v2278_v44  ;;  %v1373_v51 = vadd.f32 %v1372_v63, %v1371_v23  ;;  %v2535_v29 = vunpack.i.h.bf16 %v2533_v27 }
 0x107   : > { %v1374_v61 = vsel %vm317_vm7, %v1212_v30, 0.0  ;;  %v2534_v57 = vunpack.i.l.bf16 %v2533_v27  ;;  %v2298_v46 = vunpack.c.l.bf16 %v3358_v58  ;;  %v3429_v5 = vsel %vm1538_vm13, %v1359_v13, %v1348_v6 }
 0x108   : > { %v3416_v11 = vpop.permute.xlu1 %2547  ;;  %v1459_v28 = vsel %vm317_vm7, %v1234_v1, 0.0  ;;  %v1213_v52 = vmul.f32 %v2525_v4, %v2234_v42  ;;  %v3434_v16 = vadd.f32 %v1367_v45, %v1366_v19  ;;  %v1432_v44 = vadd.f32 %v1431_v55, %v1430_v33 }
 0x109   : > { %v1383_v62 = vsel %vm317_vm7, %v1214_v25, 0.0  ;;  %v1375_v32 = vadd.f32 %v1374_v61, %v1373_v51  ;;  %v1444_v9 = vrot.slane %v1443_v39, 2  ;;  %v1453_v27 = vrot.slane %v1452_v7, 4 }
 0x10a   : > { %v2543_v8 = vpop.permute.xlu0 %2542  ;;  %v1460_v48 = vsel %vm317_vm7, %v1235_v50, 0.0  ;;  %v1238_v3 = vmul.f32 %v2535_v29, %v2283_v15  ;;  %v1237_v18 = vmul.f32 %v2534_v57, %v2282_v2  ;;  %v1382_v30 = vsel %vm317_vm7, %v1213_v52, 0.0 }
 0x10b   : > { %v2545_v56 = vunpack.i.h.bf16 %v2543_v8  ;;  %v2544_v42 = vunpack.i.l.bf16 %v2543_v8  ;;  %v2540_v23 = vunpack.i.h.bf16 %v3394_v60  ;;  %v1461_v13 = vadd.f32 %v1460_v48, %v1459_v28 }
 0x10c   : > { %v1376_v1 = vrot.slane %v1375_v32, 4  ;;  %v2550_v31 = vunpack.i.h.bf16 %v3416_v11  ;;  %v1369_v35 = vrot.slane %v3434_v16, 1  ;;  %v1454_v2 = vadd.f32 %v1453_v27, %v1452_v7 }
 0x10d   : > { %v1236_v49 = vmul.f32 %v2545_v56, %v2279_v0  ;;  %v2549_v0 = vunpack.i.l.bf16 %v3416_v11  ;;  %v3584_v63 = vunpack.c.l.bf16 %v3297_v34  ;;  %v1471_v60 = vsel %vm317_vm7, %v1238_v3, 0.0 }
 0x10e   : > { %v2558_v59 = vpop.permute.xlu1 %2557  ;;  %v1470_v6 = vsel %vm317_vm7, %v1237_v18, 0.0  ;;  %v3585_v45 = vunpack.c.l.bf16 %v3314_v43  ;;  %v3458_v61 = vadd.f32 %v1444_v9, %v1443_v39  ;;  %v1384_v8 = vadd.f32 %v1383_v62, %v1382_v30 }
 0x10f   : > { %v2560_v19 = vunpack.i.h.bf16 %v2558_v59  ;;  %v1462_v53 = vsel %vm317_vm7, %v1236_v49, 0.0  ;;  %v3586_v7 = vunpack.c.h.bf16 %v3297_v34  ;;  %v1377_v11 = vadd.f32 %v1376_v1, %v1375_v32 }
 0x110   : > { %v2553_v33 = vpop.permute.xlu0 %2552  ;;  %v1217_v55 = vmul.f32 %v2544_v42, %v3585_v45  ;;  %v1463_v25 = vadd.f32 %v1462_v53, %v1461_v13  ;;  %v3587_v29 = vunpack.c.l.bf16 %v3308_v37  ;;  %v2559_v52 = vunpack.i.l.bf16 %v2558_v59 }
 0x111   : > { %v2554_v36 = vunpack.i.l.bf16 %v2553_v33  ;;  %v1239_v15 = vmul.f32 %v2560_v19, %v2286_v12  ;;  %v1433_v12 = vrot.slane %v1432_v44, 2  ;;  %v1216_v51 = vmul.f32 %v2540_v23, %v3586_v7 }
 0x112   : > { %v1241_v57 = vmul.f32 %v2550_v31, %v3587_v29  ;;  %v1472_v56 = vadd.f32 %v1471_v60, %v1470_v6  ;;  %v3588_v27 = vunpack.c.h.bf16 %v3305_v22  ;;  %v1455_v9 = vrot.slane %v1454_v2, 2 }
 0x113   : > { %v1215_v4 = vmul.f32 %v2554_v36, %v3584_v63  ;;  %v1473_v28 = vsel %vm317_vm7, %v1239_v15, 0.0  ;;  %v1394_v62 = vsel %vm317_vm7, %v1217_v55, 0.0  ;;  %v1464_v3 = vrot.slane %v1463_v25, 4 }
 0x114   : > { %v2568_v50 = vpop.permute.xlu1 %2567  ;;  %v1240_v48 = vmul.f32 %v2549_v0, %v3588_v27  ;;  %v2555_v34 = vunpack.i.h.bf16 %v2553_v33  ;;  %v1446_v32 = vrot.slane %v3458_v61, 1  ;;  %v3470_v42 = vadd.f32 %v1433_v12, %v1432_v44 }
 0x115   : > { %v1385_v49 = vsel %vm317_vm7, %v1215_v4, 0.0  ;;  %v2569_v39 = vunpack.i.l.bf16 %v2568_v50  ;;  %v1474_v19 = vadd.f32 %v1473_v28, %v1472_v56  ;;  %v1393_v22 = vsel %vm317_vm7, %v1216_v51, 0.0 }
 0x116   : > { %v1378_v30 = vrot.slane %v1377_v11, 2  ;;  %v3589_v23 = vunpack.c.h.bf16 %v3326_v38  ;;  %v1386_v36 = vadd.f32 %v1385_v49, %v1384_v8  ;;  %v1482_v13 = vsel %vm317_vm7, %v1241_v57, 0.0 }
 0x117   : > { %v2563_v18 = vpop.permute.xlu0 %2562  ;;  %v1218_v59 = vmul.f32 %v2569_v39, %v2243_v54  ;;  %v1481_v33 = vsel %vm317_vm7, %v1240_v48, 0.0  ;;  %v1395_v1 = vadd.f32 %v1394_v62, %v1393_v22  ;;  %v3480_v15 = vadd.f32 %v1455_v9, %v1454_v2 }
 0x118   : > { %v1220_v53 = vmul.f32 %v2559_v52, %v3589_v23  ;;  %v1465_v0 = vadd.f32 %v1464_v3, %v1463_v25  ;;  %v3590_v43 = vunpack.c.l.bf16 %v3326_v38  ;;  %v2570_v63 = vunpack.i.h.bf16 %v2568_v50 }
 0x119   : > { %v1396_v31 = vsel %vm317_vm7, %v1218_v59, 0.0  ;;  %v1475_v4 = vrot.slane %v1474_v19, 4  ;;  %v3484_v55 = vadd.f32 %v1378_v30, %v1377_v11  ;;  %v1483_v12 = vadd.f32 %v1482_v13, %v1481_v33 }
 0x11a   : > { %v1219_v54 = vmul.f32 %v2555_v34, %v3590_v43  ;;  %v1397_v60 = vadd.f32 %v1396_v31, %v1395_v1  ;;  %v1405_v8 = vsel %vm317_vm7, %v1220_v53, 0.0  ;;  %v1387_v7 = vrot.slane %v1386_v36, 4 }
 0x11b   : > { %v2578_v44 = vpop.permute.xlu1 %2577  ;;  %v2565_v29 = vunpack.i.h.bf16 %v2563_v18  ;;  %v3591_v25 = vunpack.c.h.bf16 %v3358_v58  ;;  %v3592_v28 = vunpack.c.h.bf16 %v3342_v21  ;;  %v2564_v11 = vunpack.i.l.bf16 %v2563_v18 }
 0x11c   : > { %v2580_v6 = vunpack.i.h.bf16 %v2578_v44  ;;  %v2579_v45 = vunpack.i.l.bf16 %v2578_v44  ;;  %v1404_v50 = vsel %vm317_vm7, %v1219_v54, 0.0  ;;  %v1466_v27 = vrot.slane %v1465_v0, 2 }
 0x11d   : > { %v1222_v52 = vmul.f32 %v2570_v63, %v3592_v28  ;;  %v1476_v48 = vadd.f32 %v1475_v4, %v1474_v19  ;;  %v1398_v49 = vrot.slane %v1397_v60, 4  ;;  %v1388_v9 = vadd.f32 %v1387_v7, %v1386_v36 }
 0x11e   : > { %v2573_v51 = vpop.permute.xlu0 %2572  ;;  %v1247_v2 = vmul.f32 %v2580_v6, %v2302_v24  ;;  %v1246_v38 = vmul.f32 %v2579_v45, %v3591_v25  ;;  %v3593_v59 = vunpack.c.h.bf16 %v3349_v17  ;;  %v3594_v37 = vunpack.c.l.bf16 %v3349_v17 }
 0x11f   : > { %v2575_v57 = vunpack.i.h.bf16 %v2573_v51  ;;  %v2574_v56 = vunpack.i.l.bf16 %v2573_v51  ;;  %v1415_v23 = vsel %vm317_vm7, %v1222_v52, 0.0  ;;  %v1399_v13 = vadd.f32 %v1398_v49, %v1397_v60 }
 0x120   : > { %v1504_v24 = vsel %vm317_vm7, %v1247_v2, 0.0  ;;  %v1503_v62 = vsel %vm317_vm7, %v1246_v38, 0.0  ;;  %v1244_v22 = vmul.f32 %v2565_v29, %v3593_v59  ;;  %v1389_v4 = vrot.slane %v1388_v9, 2 }
 0x121   : > { %v1242_v39 = vmul.f32 %v2575_v57, %v2291_v40  ;;  %v1223_v3 = vmul.f32 %v2574_v56, %v2254_v47  ;;  %v2588_v34 = vpop.permute.xlu1 %2587  ;;  %v1243_v40 = vmul.f32 %v2564_v11, %v3594_v37  ;;  %v1505_v33 = vadd.f32 %v1504_v24, %v1503_v62 }
 0x122   : > { %v2590_v30 = vunpack.i.h.bf16 %v2588_v34  ;;  %v2589_v19 = vunpack.i.l.bf16 %v2588_v34  ;;  %v1493_v17 = vsel %vm317_vm7, %v1244_v22, 0.0  ;;  %v1477_v7 = vrot.slane %v1476_v48, 2 }
 0x123   : > { %v1484_v18 = vsel %vm317_vm7, %v1242_v39, 0.0  ;;  %v1416_v36 = vsel %vm317_vm7, %v1223_v3, 0.0  ;;  %v1492_v60 = vsel %vm317_vm7, %v1243_v40, 0.0  ;;  %v1400_v20 = vrot.slane %v1399_v13, 2 }
 0x124   : > { %v1485_v53 = vadd.f32 %v1484_v18, %v1483_v12  ;;  %v1248_v47 = vmul.f32 %v2590_v30, %v2303_v10  ;;  %v1224_v1 = vmul.f32 %v2589_v19, %v2255_v41  ;;  %v2583_v31 = vpop.permute.xlu0 %2582  ;;  %v1417_v43 = vadd.f32 %v1416_v36, %v1415_v23 }
 0x125   : > { %v2585_v54 = vunpack.i.h.bf16 %v2583_v31  ;;  %v2584_v63 = vunpack.i.l.bf16 %v2583_v31  ;;  %v1406_v29 = vadd.f32 %v1405_v8, %v1404_v50  ;;  %v1467_v57 = vadd.f32 %v1466_v27, %v1465_v0 }
 0x126   : > { %v1486_v44 = vrot.slane %v1485_v53, 4  ;;  %v1506_v6 = vsel %vm317_vm7, %v1248_v47, 0.0  ;;  %v1418_v45 = vsel %vm317_vm7, %v1224_v1, 0.0  ;;  %v1494_v28 = vadd.f32 %v1493_v17, %v1492_v60 }
 0x127   : > { %v1419_v26 = vadd.f32 %v1418_v45, %v1417_v43  ;;  %v1507_v10 = vadd.f32 %v1506_v6, %v1505_v33  ;;  %v1245_v41 = vmul.f32 %v2585_v54, %v2298_v46  ;;  %v1221_v51 = vmul.f32 %v2584_v63, %v2250_v14 }
 0x128   : > { %v1487_v12 = vadd.f32 %v1486_v44, %v1485_v53  ;;  %v1390_v56 = vadd.f32 %v1389_v4, %v1388_v9  ;;  %v1435_v58 = vrot.slane %v3470_v42, 1  ;;  %v1478_v46 = vadd.f32 %v1477_v7, %v1476_v48 }
 0x129   : > { %v1420_v25 = vrot.slane %v1419_v26, 4  ;;  %v1508_v38 = vrot.slane %v1507_v10, 4  ;;  %v1495_v52 = vsel %vm317_vm7, %v1245_v41, 0.0  ;;  %v1407_v11 = vsel %vm317_vm7, %v1221_v51, 0.0 }
 0x12a   : > { %v1488_v2 = vrot.slane %v1487_v12, 2  ;;  %v1408_v24 = vadd.f32 %v1407_v11, %v1406_v29  ;;  %v1401_v62 = vadd.f32 %v1400_v20, %v1399_v13  ;;  %v1496_v21 = vadd.f32 %v1495_v52, %v1494_v28  ;;  %v815_v20 = vld [vmem:[#allocation2 + $0x8] sm:$0xff]  ;;  %v816_v29 = vld [vmem:[#allocation2 + $0x10] sm:$0xff] }
 0x12b   : > { %v1421_v49 = vadd.f32 %v1420_v25, %v1419_v26  ;;  %v1509_v39 = vadd.f32 %v1508_v38, %v1507_v10  ;;  %v1457_v0 = vrot.slane %v3480_v15, 1  ;;  %v1380_v27 = vrot.slane %v3484_v55, 1  ;;  %v1912_v25 = vpop.permute.xlu0 %1911 }
 0x12c   : > { %v1489_v14 = vadd.f32 %v1488_v2, %v1487_v12  ;;  %v1409_v3 = vrot.slane %v1408_v24, 4  ;;  %v1468_v34 = vrot.slane %v1467_v57, 1  ;;  %v1497_v59 = vrot.slane %v1496_v21, 4 }
 0x12d   : > { %v1422_v8 = vrot.slane %v1421_v49, 2  ;;  %v1510_v50 = vrot.slane %v1509_v39, 2  ;;  %v1391_v22 = vrot.slane %v1390_v56, 1  ;;  %v1370_v48 = vadd.f32 %v1369_v35, %v3434_v16 }
 0x12e   : > { %v1410_v30 = vadd.f32 %v1409_v3, %v1408_v24  ;;  %v1479_v19 = vrot.slane %v1478_v46, 1  ;;  %v1402_v23 = vrot.slane %v1401_v62, 1  ;;  %v1498_v37 = vadd.f32 %v1497_v59, %v1496_v21 }
 0x12f   : > { %v1423_v9 = vadd.f32 %v1422_v8, %v1421_v49  ;;  %v1511_v18 = vadd.f32 %v1510_v50, %v1509_v39  ;;  %v1447_v40 = vadd.f32 %v1446_v32, %v3458_v61  ;;  %v1436_v53 = vadd.f32 %v1435_v58, %v3470_v42 }
 0x130   : > { %v1490_v36 = vrot.slane %v1489_v14, 1  ;;  %v1411_v13 = vrot.slane %v1410_v30, 2  ;;  %v1458_v33 = vadd.f32 %v1457_v0, %v3480_v15  ;;  %v1381_v47 = vadd.f32 %v1380_v27, %v3484_v55 }
 0x131   : > { %v1424_v1 = vrot.slane %v1423_v9, 1  ;;  %v1499_v31 = vrot.slane %v1498_v37, 2  ;;  %v1469_v44 = vadd.f32 %v1468_v34, %v1467_v57  ;;  %v1392_v43 = vadd.f32 %v1391_v22, %v1390_v56 }
 0x132   : > { %v1512_v16 = vrot.slane %v1511_v18, 1  ;;  %v1412_v35 = vadd.f32 %v1411_v13, %v1410_v30  ;;  %v1480_v54 = vadd.f32 %v1479_v19, %v1478_v46  ;;  %v1403_v63 = vadd.f32 %v1402_v23, %v1401_v62  ;;  %v1900_v62 = vld [vmem:[#allocation2] sm:$0xff] }
 0x133   : > { %v1500_v4 = vadd.f32 %v1499_v31, %v1498_v37  ;;  %v1553_v61 = vsel %vm1540_vm3, %v1370_v48, %v3429_v5  ;;  %v1559_v32 = vsel %vm1538_vm13, %v1447_v40, %v1436_v53  ;;  %v1491_v42 = vadd.f32 %v1490_v36, %v1489_v14 }
 0x134   : > { %v1413_v17 = vrot.slane %v1412_v35, 1  ;;  %v1560_v15 = vsel %vm1540_vm3, %v1458_v33, %v1559_v32  ;;  %v1554_v55 = vsel %vm1542_vm4, %v1381_v47, %v1553_v61  ;;  %v1425_v6 = vadd.f32 %v1424_v1, %v1423_v9  ;;  %v1939_v9 = vld [vmem:[%s308_s12] sm:$0xff] }
 0x135   : > { %v1501_v45 = vrot.slane %v1500_v4, 1  ;;  %v1561_v60 = vsel %vm1542_vm4, %v1469_v44, %v1560_v15  ;;  %v1555_v12 = vsel %vm1544_vm10, %v1392_v43, %v1554_v55  ;;  %v1513_v26 = vadd.f32 %v1512_v16, %v1511_v18 }
 0x136   : > { %v1414_v10 = vadd.f32 %v1413_v17, %v1412_v35  ;;  %v1562_v7 = vsel %vm1544_vm10, %v1480_v54, %v1561_v60  ;;  %v1556_v5 = vsel %vm1546_vm6, %v1403_v63, %v1555_v12  ;;  %2591 = vrcp.f32 %v1912_v25 }
 0x137   : > { %v1502_v41 = vadd.f32 %v1501_v45, %v1500_v4  ;;  %v1563_v51 = vsel %vm1546_vm6, %v1491_v42, %v1562_v7 }
 0x138   : > { %v1557_v2 = vsel %vm1548_vm8, %v1414_v10, %v1556_v5 }
 0x139   : > { %v1558_v38 = vsel %vm1550_vm11, %v1425_v6, %v1557_v2  ;;  %v1564_v57 = vsel %vm1548_vm8, %v1502_v41, %v1563_v51 }
 0x13a   : > { %v1565_v28 = vsel %vm1550_vm11, %v1513_v26, %v1564_v57  ;;  %v1570_v52 = vadd.f32 %v1558_v38, %v815_v20 }
 0x13b   : > { %v1571_v11 = vadd.f32 %v1565_v28, %v816_v29 }
 0x13c   : > { %1573 = vst.msk [vmem:[#allocation2 + $0x8] sm:$0xff] %vm317_vm7, %v1570_v52 }
 0x13d   : > { %1574 = vst.msk [vmem:[#allocation2 + $0x10] sm:$0xff] %vm317_vm7, %v1571_v11 }
 0x13f   : > { %v1922_v49 = vpop.permute.xlu0 %1921 }
 0x140   : > { %v1917_v56 = vpop.permute.xlu1 %1916  ;;  %v2592_v39 = vpop.eup %2591 }
 0x141   : > { %2593 = vrcp.f32 %v1917_v56  ;;  %v1925_v14 = vmul.f32 %v2592_v39, %v1900_v62 }
 0x142   : > { %2595 = vrcp.f32 %v1922_v49 }
 0x143   : > { %v1901_v24 = vld [vmem:[#allocation2 + $0x8] sm:$0xff] }
 0x144   : > { %v1902_v58 = vld [vmem:[#allocation2 + $0x10] sm:$0xff] }
 0x14b   : > { %v2594_v46 = vpop.eup %2593 }
 0x14c   : > { %v2596_v21 = vpop.eup %2595  ;;  %v1927_v8 = vmul.f32 %v2594_v46, %v1901_v24 }
 0x14d   : > { %v1929_v50 = vmul.f32 %v2596_v21, %v1902_v58 }
 0x14e   : > { %v1930_v3 = vmul.f32 %v1927_v8, %v1925_v14 }
 0x14f   : > { %v1934_v0 = vmul.f32 %v1929_v50, %v1925_v14 }
 0x150   : > { %v1931_v27 = vsel %vm317_vm7, %v1930_v3, 0.0 }
 0x151   : > { %v1935_v34 = vsel %vm317_vm7, %v1934_v0, 0.0  ;;  %1932 = vadd.xlane.f32.xlu1 %v1931_v27 }
 0x152   : > { %1936 = vadd.xlane.f32.xlu0 %v1935_v34 }
 0x1de   : > { %v1933_v59 = vpop.xlane.xlu1 %1932 }
 0x1df   : > { %v1937_v22 = vpop.xlane.xlu0 %1936 }
 0x1e0   : > { %v1938_v18 = vsub.f32 %v1933_v59, %v1937_v22 }
 0x1e2   : > { %v1940_v30 = vsub.f32 %v1938_v18, %v1939_v9 }
 0x1e4   : > { %v1941_v48 = vmul.f32 %v1940_v30, %v1940_v30 }
 0x1e6   : > { %1942 = vst.msk [vmem:[%s312_s22] sm:$0xff] %vm321_vm0, %v1941_v48 }
 0x1e7 PF: > { %s16_s17 = sadd.s32 1, %s2647_s17   ;;  %s3595_s12 = smov %s2631_s13 }
 0x1e8   : > { %p13_p13 = scmp.ge.s32.totalorder %s16_s17, 4   ;;  %s3596_s13 = smov %s2635_s14 }
 0x1e9   : > { %s3597_s14 = smov %s2725_s24  ;;  %s3598_s15 = smov %s2643_s16 }
 0x1ea   : > { %s3599_s16 = smov %s3601_s19  ;;  %15 = sbr.rel (!%p13_p13) target bundleno = 4 (0x4), region = 134 }
 0x1f1   :  { %1962 = vsyncpa [#allocation5], 1 }
 0x1f2   :  { %1964 = vsyncpa [#allocation5 + $0x1], 1 }

</bundles_post_ra>
